<compile_context>
chip_gen: v7x
topology: tpu7x:2x2x1
jax: 0.10.0
libtpu: 0.0.40
codegen_flags: <defaults>
</compile_context>

<pallas_src>
import functools
import math

import jax
import jax.numpy as jnp
from jax import lax
from jax.experimental import pallas as pl
from jax.experimental.pallas import tpu as pltpu


# ------------------------------ Pallas kernel -------------------------------


def _mha_kernel(x_q_ref, x_kv_ref, wq_ref, bq_ref, wkv_ref, bkv_ref,
                wo_ref, bo_ref, mask_ref, *rest,
                num_heads, nh_pad, inv_scale, with_alphas, approx_recip):
    if with_alphas:
        out_ref, alpha_ref, acc_ref = rest
    else:
        out_ref, acc_ref = rest
        alpha_ref = None

    H = num_heads
    HNp = H * nh_pad
    f32 = jnp.float32
    mxu_dtype = x_q_ref.dtype          # f32 (exact build) or bf16 (perf build)

    x_q = x_q_ref[0]                   # (TQ, dim)  query rows of this tile
    x_kv = x_kv_ref[0]                 # (S,  dim)  full sequence for K/V
    mask = mask_ref[0].astype(f32)     # (TQ, S)    0/1, upcast once (v5e VPU is f32)

    # Wide MXU projections, f32 accumulation, f32 bias add.
    q_all = jnp.dot(x_q, wq_ref[...], preferred_element_type=f32) + bq_ref[...]     # (TQ, HNp)
    kv_all = jnp.dot(x_kv, wkv_ref[...], preferred_element_type=f32) + bkv_ref[...]  # (S, 2*HNp)

    # Cast once for the per-head MXU ops (no-op on the f32 build).
    q_m = q_all.astype(mxu_dtype)
    kv_m = kv_all.astype(mxu_dtype)

    for h in range(H):                 # static unroll, H is small
        lo = h * nh_pad                # lane-aligned (nh_pad is a 128 multiple)
        qh = q_m[:, lo:lo + nh_pad]                    # (TQ, nh_pad)
        kh = kv_m[:, lo:lo + nh_pad]                   # (S,  nh_pad)
        vh = kv_m[:, HNp + lo:HNp + lo + nh_pad]       # (S,  nh_pad)

        # Q K^T without materializing a transpose: contract the last dims.
        s = lax.dot_general(qh, kh, (((1,), (1,)), ((), ())),
                            preferred_element_type=f32) * inv_scale       # (TQ, S)

        # Softmax in f32 on the VPU/EUP.
        m = jnp.max(s, axis=-1, keepdims=True)
        e = jnp.exp(s - m)
        denom = jnp.sum(e, axis=-1, keepdims=True)
        p = e * pl.reciprocal(denom, approx=approx_recip)
        p = p * mask                   # post-softmax zeroing, NO renormalization

        if alpha_ref is not None:
            alpha_ref[0, h] = p

        # Head output straight into its lane-aligned slice of the scratch slab
        # (padded V columns are zero, so padded output columns stay zero).
        acc_ref[:, lo:lo + nh_pad] = jnp.dot(p.astype(mxu_dtype), vh,
                                             preferred_element_type=f32)

    # Fused output projection: one wide (TQ, HNp) @ (HNp, dim) MXU matmul.
    y = jnp.dot(acc_ref[...].astype(mxu_dtype), wo_ref[...],
                preferred_element_type=f32) + bo_ref[...]
    out_ref[...] = y[None].astype(out_ref.dtype)


# --------------------------------- wrapper ----------------------------------


def multi_headed_attention(x, attn_mask, params, *, num_heads, n_hidden,
                           q_tile=None, mxu_dtype=jnp.float32,
                           return_alphas=True):
    """x: (B, S, dim) f32, attn_mask: (B, S, S) int (0/1).

    Returns (attn_output (B, S, dim), attn_alphas (B, num_heads, S, S) or None).

    mxu_dtype=jnp.bfloat16 is the perf build for v5e/v6e/v7x: MXU operands in
    bf16, accumulation and all softmax/mask math in f32.
    return_alphas=False drops the (B,H,S,S) output entirely (v7x VMEM/HBM win).
    """
    B, S, dim = x.shape
    H, nh = num_heads, n_hidden

    # Lane-align each head's packed columns (zero-padded weights/biases) so
    # per-head slices and scratch stores never cut a 128-lane vreg.
    nh_pad = ((nh + 127) // 128) * 128
    HNp = H * nh_pad

    if q_tile is None:
        q_tile = S if S <= 256 else 256
    assert S % q_tile == 0, "q_tile must divide S"
    n_qt = S // q_tile

    wq, bq = params["wq"], params["bq"]        # (H, dim, nh), (H, nh)
    wk, bk = params["wk"], params["bk"]
    wv, bv = params["wv"], params["bv"]
    wo, bo = params["wo"], params["bo"]        # (H*nh, dim), (dim,)

    def pad_heads(w, b):
        # (H, dim, nh) -> (dim, H*nh_pad), head h owns cols [h*nh_pad, h*nh_pad+nh)
        wpad = jnp.zeros((H, dim, nh_pad), w.dtype).at[:, :, :nh].set(w)
        bpad = jnp.zeros((H, nh_pad), b.dtype).at[:, :nh].set(b)
        return jnp.transpose(wpad, (1, 0, 2)).reshape(dim, HNp), bpad.reshape(HNp)

    wq_p, bq_p = pad_heads(wq, bq)
    wk_p, bk_p = pad_heads(wk, bk)
    wv_p, bv_p = pad_heads(wv, bv)

    w_kv = jnp.concatenate([wk_p, wv_p], axis=1)                      # (dim, 2*HNp)
    b_kv = jnp.concatenate([bk_p, bv_p]).reshape(1, 2 * HNp)          # f32
    b_q = bq_p.reshape(1, HNp)                                        # f32

    wo3 = wo.reshape(H, nh, dim)
    wo_p = jnp.zeros((H, nh_pad, dim), wo.dtype).at[:, :nh, :].set(wo3).reshape(HNp, dim)
    bo_p = bo.reshape(1, dim)

    # MXU operands (activations + weights) in mxu_dtype; biases stay f32.
    x_in = x.astype(mxu_dtype)
    wq_p = wq_p.astype(mxu_dtype)
    w_kv = w_kv.astype(mxu_dtype)
    wo_p = wo_p.astype(mxu_dtype)
    mask_bf = attn_mask.astype(jnp.bfloat16)   # 0/1 exact in bf16, half the DMA bytes

    inv_scale = 1.0 / math.sqrt(n_hidden // num_heads)
    kernel = functools.partial(
        _mha_kernel, num_heads=H, nh_pad=nh_pad, inv_scale=inv_scale,
        with_alphas=return_alphas,
        approx_recip=(jnp.dtype(mxu_dtype) == jnp.dtype(jnp.bfloat16)))

    in_specs = [
        pl.BlockSpec((1, q_tile, dim), lambda b, qt: (b, qt, 0)),   # x (query tile)
        pl.BlockSpec((1, S, dim), lambda b, qt: (b, 0, 0)),         # x (full-S for K/V)
        pl.BlockSpec((dim, HNp), lambda b, qt: (0, 0)),             # w_q   (constant)
        pl.BlockSpec((1, HNp), lambda b, qt: (0, 0)),               # b_q
        pl.BlockSpec((dim, 2 * HNp), lambda b, qt: (0, 0)),         # w_kv
        pl.BlockSpec((1, 2 * HNp), lambda b, qt: (0, 0)),           # b_kv
        pl.BlockSpec((HNp, dim), lambda b, qt: (0, 0)),             # w_o
        pl.BlockSpec((1, dim), lambda b, qt: (0, 0)),               # b_o
        pl.BlockSpec((1, q_tile, S), lambda b, qt: (b, qt, 0)),     # mask (bf16 0/1)
    ]

    out_shapes = [jax.ShapeDtypeStruct((B, S, dim), jnp.float32)]
    out_specs = [pl.BlockSpec((1, q_tile, dim), lambda b, qt: (b, qt, 0))]
    if return_alphas:
        out_shapes.append(jax.ShapeDtypeStruct((B, H, S, S), jnp.float32))
        out_specs.append(pl.BlockSpec((1, H, q_tile, S), lambda b, qt: (b, 0, qt, 0)))

    # Size the scoped VMEM limit to the actual per-step blocks (double-buffered)
    # plus headroom; never below the 32 MiB default so small shapes are safe.
    itm = jnp.dtype(mxu_dtype).itemsize
    blk_bytes = (
        q_tile * dim * itm + S * dim * itm                              # x tiles
        + (dim * HNp + dim * 2 * HNp + HNp * dim) * itm                 # weights
        + (3 * HNp + dim) * 4                                           # biases (f32)
        + q_tile * S * 2                                                # mask (bf16)
        + q_tile * dim * 4                                              # output tile
        + (H * q_tile * S * 4 if return_alphas else 0)                  # alphas tile
    )
    scratch_bytes = q_tile * HNp * 4
    vmem_limit = int(max(32 << 20, min(2 * blk_bytes + scratch_bytes + (8 << 20),
                                       100 << 20)))

    results = pl.pallas_call(
        kernel,
        out_shape=tuple(out_shapes),
        grid_spec=pltpu.PrefetchScalarGridSpec(
            num_scalar_prefetch=0,
            grid=(B, n_qt),
            in_specs=in_specs,
            out_specs=out_specs,
            scratch_shapes=[pltpu.VMEM((q_tile, HNp), jnp.float32)],
        ),
        compiler_params=pltpu.CompilerParams(
            dimension_semantics=("parallel", "parallel"),
            vmem_limit_bytes=vmem_limit),
    )(x_in, x_in, wq_p, b_q, w_kv, b_kv, wo_p, bo_p, mask_bf)

    # TODO(synk): for very large S with return_alphas=False, tile K/V with an
    # online-softmax (flash) inner loop instead of keeping full-S K/V per step.
    if return_alphas:
        return results[0], results[1]
    return results[0], None


# ----------------------------- pure-JAX reference ----------------------------


def reference(x, attn_mask, params, *, num_heads, n_hidden):
    wq, bq = params["wq"], params["bq"]
    wk, bk = params["wk"], params["bk"]
    wv, bv = params["wv"], params["bv"]
    wo, bo = params["wo"], params["bo"]
    scale = math.sqrt(n_hidden // num_heads)
    outs, alphas = [], []
    for h in range(num_heads):
        Q = x @ wq[h] + bq[h]
        K = x @ wk[h] + bk[h]
        V = x @ wv[h] + bv[h]
        p = jax.nn.softmax((Q @ jnp.swapaxes(K, -1, -2)) / scale, axis=-1)
        p = jnp.where(attn_mask == 0, 0.0, p)
        outs.append(p @ V)
        alphas.append(p)
    return jnp.concatenate(outs, axis=-1) @ wo + bo, jnp.stack(alphas, axis=1)


# ----------------------------------- main ------------------------------------

if __name__ == "__main__":
    B, S, dim = 2, 32, 32
    num_heads, n_hidden = 4, 16

    key = jax.random.PRNGKey(0)
    keys = jax.random.split(key, 12)

    def linear_init(kw, kb, fan_in, shape_w, shape_b):
        bound = 1.0 / math.sqrt(fan_in)
        w = jax.random.uniform(kw, shape_w, jnp.float32, -bound, bound)
        b = jax.random.uniform(kb, shape_b, jnp.float32, -bound, bound)
        return w, b

    # per-head Q/K/V projections, stored pre-transposed as (dim, n_hidden)
    wq, bq = linear_init(keys[0], keys[1], dim, (num_heads, dim, n_hidden), (num_heads, n_hidden))
    wk, bk = linear_init(keys[2], keys[3], dim, (num_heads, dim, n_hidden), (num_heads, n_hidden))
    wv, bv = linear_init(keys[4], keys[5], dim, (num_heads, dim, n_hidden), (num_heads, n_hidden))
    # output projection (n_hidden*num_heads -> dim), stored as (H*nh, dim)
    wo, bo = linear_init(keys[6], keys[7], n_hidden * num_heads,
                         (n_hidden * num_heads, dim), (dim,))

    params = dict(wq=wq, bq=bq, wk=wk, bk=bk, wv=wv, bv=bv, wo=wo, bo=bo)

    x = jax.random.normal(keys[8], (B, S, dim), jnp.float32)
    attn_mask = jax.random.bernoulli(keys[9], 0.8, (B, S, S)).astype(jnp.int32)

    ref_out, ref_alphas = reference(x, attn_mask, params,
                                    num_heads=num_heads, n_hidden=n_hidden)

    # 1) Exact build: f32 MXU operands, two query tiles per batch element.
    out, alphas = multi_headed_attention(
        x, attn_mask, params, num_heads=num_heads, n_hidden=n_hidden,
        q_tile=16, mxu_dtype=jnp.float32, return_alphas=True)
    out = jax.block_until_ready(out)
    alphas = jax.block_until_ready(alphas)
    assert out.shape == (B, S, dim)
    assert alphas.shape == (B, num_heads, S, S)
    assert jnp.allclose(out, ref_out, atol=2e-5, rtol=2e-5)
    assert jnp.allclose(alphas, ref_alphas, atol=2e-5, rtol=2e-5)

    # 2) Perf build: bf16 MXU operands, f32 accumulation / softmax (looser tol).
    out_bf, alphas_bf = multi_headed_attention(
        x, attn_mask, params, num_heads=num_heads, n_hidden=n_hidden,
        q_tile=16, mxu_dtype=jnp.bfloat16, return_alphas=True)
    out_bf = jax.block_until_ready(out_bf)
    alphas_bf = jax.block_until_ready(alphas_bf)
    assert jnp.allclose(out_bf, ref_out, atol=3e-2, rtol=3e-2)
    assert jnp.allclose(alphas_bf, ref_alphas, atol=3e-2, rtol=3e-2)

    # 3) No-alphas perf variant (drops the dominant HBM writeback on v5e/v7x).
    out_na, _ = multi_headed_attention(
        x, attn_mask, params, num_heads=num_heads, n_hidden=n_hidden,
        q_tile=16, mxu_dtype=jnp.bfloat16, return_alphas=False)
    out_na = jax.block_until_ready(out_na)
    assert out_na.shape == (B, S, dim)
    assert jnp.allclose(out_na, ref_out, atol=3e-2, rtol=3e-2)

    print("KERNEL_OK")
</pallas_src>

<mosaic_0001>
module attributes {stable_mosaic.version = 11 : i64} {
  func.func @_mha_kernel(%arg0: i32, %arg1: i32, %arg2: memref<1x16x32xf32, #tpu.memory_space<vmem>>, %arg3: memref<1x32x32xf32, #tpu.memory_space<vmem>>, %arg4: memref<32x512xf32, #tpu.memory_space<vmem>>, %arg5: memref<1x512xf32, #tpu.memory_space<vmem>>, %arg6: memref<32x1024xf32, #tpu.memory_space<vmem>>, %arg7: memref<1x1024xf32, #tpu.memory_space<vmem>>, %arg8: memref<512x32xf32, #tpu.memory_space<vmem>>, %arg9: memref<1x32xf32, #tpu.memory_space<vmem>>, %arg10: memref<1x16x32xbf16, #tpu.memory_space<vmem>>, %arg11: memref<1x16x32xf32, #tpu.memory_space<vmem>>, %arg12: memref<1x4x16x32xf32, #tpu.memory_space<vmem>>, %arg13: memref<16x512xf32, #tpu.memory_space<vmem>>) attributes {dimension_semantics = [#tpu.dimension_semantics<parallel>, #tpu.dimension_semantics<parallel>], iteration_bounds = array<i64: 2, 2>, scalar_prefetch = 0 : i64, scratch_operands = 1 : i64, tpu.core_type = #tpu.core_type<tc>, window_params = [{transform_indices = @transform_0, window_bounds = array<i64: 1, 16, 32>}, {transform_indices = @transform_1, window_bounds = array<i64: 1, 32, 32>}, {pipeline_mode = #tpu.pipeline_mode<synchronous>, transform_indices = @transform_2, window_bounds = array<i64: 32, 512>}, {pipeline_mode = #tpu.pipeline_mode<synchronous>, transform_indices = @transform_3, window_bounds = array<i64: 1, 512>}, {pipeline_mode = #tpu.pipeline_mode<synchronous>, transform_indices = @transform_4, window_bounds = array<i64: 32, 1024>}, {pipeline_mode = #tpu.pipeline_mode<synchronous>, transform_indices = @transform_5, window_bounds = array<i64: 1, 1024>}, {pipeline_mode = #tpu.pipeline_mode<synchronous>, transform_indices = @transform_6, window_bounds = array<i64: 512, 32>}, {pipeline_mode = #tpu.pipeline_mode<synchronous>, transform_indices = @transform_7, window_bounds = array<i64: 1, 32>}, {transform_indices = @transform_8, window_bounds = array<i64: 1, 16, 32>}, {transform_indices = @transform_9, window_bounds = array<i64: 1, 16, 32>}, {transform_indices = @transform_10, window_bounds = array<i64: 1, 4, 16, 32>}]} {
    %c0 = arith.constant 0 : index
    %c0_0 = arith.constant 0 : index
    %c0_1 = arith.constant 0 : index
    %0 = vector.load %arg2[%c0, %c0_0, %c0_1] : memref<1x16x32xf32, #tpu.memory_space<vmem>>, vector<1x16x32xf32>
    %1 = vector.shape_cast %0 : vector<1x16x32xf32> to vector<16x32xf32>
    %c0_2 = arith.constant 0 : index
    %c0_3 = arith.constant 0 : index
    %c0_4 = arith.constant 0 : index
    %2 = vector.load %arg3[%c0_2, %c0_3, %c0_4] : memref<1x32x32xf32, #tpu.memory_space<vmem>>, vector<1x32x32xf32>
    %3 = vector.shape_cast %2 : vector<1x32x32xf32> to vector<32x32xf32>
    %c0_5 = arith.constant 0 : index
    %c0_6 = arith.constant 0 : index
    %c0_7 = arith.constant 0 : index
    %4 = vector.load %arg10[%c0_5, %c0_6, %c0_7] : memref<1x16x32xbf16, #tpu.memory_space<vmem>>, vector<1x16x32xbf16>
    %5 = vector.shape_cast %4 : vector<1x16x32xbf16> to vector<16x32xbf16>
    %6 = arith.extf %5 : vector<16x32xbf16> to vector<16x32xf32>
    %c0_8 = arith.constant 0 : index
    %c0_9 = arith.constant 0 : index
    %7 = vector.load %arg4[%c0_8, %c0_9] : memref<32x512xf32, #tpu.memory_space<vmem>>, vector<32x512xf32>
    %cst = arith.constant dense<0.000000e+00> : vector<16x512xf32>
    %8 = tpu.matmul %1, %7, %cst {dimension_numbers = #tpu.dot_dimension_numbers<[1], [0], [0], [1], [0, 0, 1, 1], [], []>} : vector<16x32xf32>, vector<32x512xf32>, vector<16x512xf32> -> vector<16x512xf32>
    %c0_10 = arith.constant 0 : index
    %c0_11 = arith.constant 0 : index
    %9 = vector.load %arg5[%c0_10, %c0_11] : memref<1x512xf32, #tpu.memory_space<vmem>>, vector<1x512xf32>
    %10 = vector.broadcast %9 : vector<1x512xf32> to vector<16x512xf32>
    %11 = arith.addf %8, %10 : vector<16x512xf32>
    %c0_12 = arith.constant 0 : index
    %c0_13 = arith.constant 0 : index
    %12 = vector.load %arg6[%c0_12, %c0_13] : memref<32x1024xf32, #tpu.memory_space<vmem>>, vector<32x1024xf32>
    %cst_14 = arith.constant dense<0.000000e+00> : vector<32x1024xf32>
    %13 = tpu.matmul %3, %12, %cst_14 {dimension_numbers = #tpu.dot_dimension_numbers<[1], [0], [0], [1], [0, 0, 1, 1], [], []>} : vector<32x32xf32>, vector<32x1024xf32>, vector<32x1024xf32> -> vector<32x1024xf32>
    %c0_15 = arith.constant 0 : index
    %c0_16 = arith.constant 0 : index
    %14 = vector.load %arg7[%c0_15, %c0_16] : memref<1x1024xf32, #tpu.memory_space<vmem>>, vector<1x1024xf32>
    %15 = vector.broadcast %14 : vector<1x1024xf32> to vector<32x1024xf32>
    %16 = arith.addf %13, %15 : vector<32x1024xf32>
    %17 = vector.extract_strided_slice %11 {offsets = [0, 0], sizes = [16, 128], strides = [1, 1]} : vector<16x512xf32> to vector<16x128xf32>
    %18 = vector.extract_strided_slice %16 {offsets = [0, 0], sizes = [32, 128], strides = [1, 1]} : vector<32x1024xf32> to vector<32x128xf32>
    %19 = vector.extract_strided_slice %16 {offsets = [0, 512], sizes = [32, 128], strides = [1, 1]} : vector<32x1024xf32> to vector<32x128xf32>
    %cst_17 = arith.constant dense<0.000000e+00> : vector<16x32xf32>
    %20 = tpu.matmul %17, %18, %cst_17 {dimension_numbers = #tpu.dot_dimension_numbers<[1], [1], [0], [0], [0, 0, 1, 0], [], []>} : vector<16x128xf32>, vector<32x128xf32>, vector<16x32xf32> -> vector<16x32xf32>
    %cst_18 = arith.constant 5.000000e-01 : f32
    %21 = vector.broadcast %cst_18 : f32 to vector<16x32xf32>
    %22 = arith.mulf %20, %21 : vector<16x32xf32>
    %cst_19 = arith.constant dense<0xFF800000> : vector<16xf32>
    %23 = vector.multi_reduction <maximumf>, %22, %cst_19 [1] : vector<16x32xf32> to vector<16xf32>
    %24 = vector.shape_cast %23 : vector<16xf32> to vector<16x1xf32>
    %25 = vector.broadcast %24 : vector<16x1xf32> to vector<16x32xf32>
    %26 = arith.subf %22, %25 : vector<16x32xf32>
    %27 = math.exp %26 : vector<16x32xf32>
    %cst_20 = arith.constant dense<0.000000e+00> : vector<16xf32>
    %28 = vector.multi_reduction <add>, %27, %cst_20 [1] : vector<16x32xf32> to vector<16xf32>
    %29 = vector.shape_cast %28 : vector<16xf32> to vector<16x1xf32>
    %30 = tpu.reciprocal %29 : vector<16x1xf32> -> vector<16x1xf32>
    %31 = vector.broadcast %30 : vector<16x1xf32> to vector<16x32xf32>
    %32 = arith.mulf %27, %31 : vector<16x32xf32>
    %33 = arith.mulf %32, %6 : vector<16x32xf32>
    %c0_21 = arith.constant 0 : index
    %c0_22 = arith.constant 0 : index
    %c0_23 = arith.constant 0 : index
    %c0_24 = arith.constant 0 : index
    %34 = vector.load %arg12[%c0_21, %c0_22, %c0_23, %c0_24] : memref<1x4x16x32xf32, #tpu.memory_space<vmem>>, vector<1x1x16x32xf32>
    %35 = vector.shape_cast %34 : vector<1x1x16x32xf32> to vector<16x32xf32>
    %36 = vector.shape_cast %33 : vector<16x32xf32> to vector<1x1x16x32xf32>
    tpu.vector_store %arg12[%c0_21, %c0_22, %c0_23, %c0_24], %36 {strides = array<i32>} : memref<1x4x16x32xf32, #tpu.memory_space<vmem>>, vector<1x1x16x32xf32>,
    %cst_25 = arith.constant dense<0.000000e+00> : vector<16x128xf32>
    %37 = tpu.matmul %33, %19, %cst_25 {dimension_numbers = #tpu.dot_dimension_numbers<[1], [0], [0], [1], [0, 0, 1, 1], [], []>} : vector<16x32xf32>, vector<32x128xf32>, vector<16x128xf32> -> vector<16x128xf32>
    %c0_26 = arith.constant 0 : index
    %c0_27 = arith.constant 0 : index
    %38 = vector.load %arg13[%c0_26, %c0_27] : memref<16x512xf32, #tpu.memory_space<vmem>>, vector<16x128xf32>
    tpu.vector_store %arg13[%c0_26, %c0_27], %37 {strides = array<i32>} : memref<16x512xf32, #tpu.memory_space<vmem>>, vector<16x128xf32>,
    %39 = vector.extract_strided_slice %11 {offsets = [0, 128], sizes = [16, 128], strides = [1, 1]} : vector<16x512xf32> to vector<16x128xf32>
    %40 = vector.extract_strided_slice %16 {offsets = [0, 128], sizes = [32, 128], strides = [1, 1]} : vector<32x1024xf32> to vector<32x128xf32>
    %41 = vector.extract_strided_slice %16 {offsets = [0, 640], sizes = [32, 128], strides = [1, 1]} : vector<32x1024xf32> to vector<32x128xf32>
    %cst_28 = arith.constant dense<0.000000e+00> : vector<16x32xf32>
    %42 = tpu.matmul %39, %40, %cst_28 {dimension_numbers = #tpu.dot_dimension_numbers<[1], [1], [0], [0], [0, 0, 1, 0], [], []>} : vector<16x128xf32>, vector<32x128xf32>, vector<16x32xf32> -> vector<16x32xf32>
    %cst_29 = arith.constant 5.000000e-01 : f32
    %43 = vector.broadcast %cst_29 : f32 to vector<16x32xf32>
    %44 = arith.mulf %42, %43 : vector<16x32xf32>
    %cst_30 = arith.constant dense<0xFF800000> : vector<16xf32>
    %45 = vector.multi_reduction <maximumf>, %44, %cst_30 [1] : vector<16x32xf32> to vector<16xf32>
    %46 = vector.shape_cast %45 : vector<16xf32> to vector<16x1xf32>
    %47 = vector.broadcast %46 : vector<16x1xf32> to vector<16x32xf32>
    %48 = arith.subf %44, %47 : vector<16x32xf32>
    %49 = math.exp %48 : vector<16x32xf32>
    %cst_31 = arith.constant dense<0.000000e+00> : vector<16xf32>
    %50 = vector.multi_reduction <add>, %49, %cst_31 [1] : vector<16x32xf32> to vector<16xf32>
    %51 = vector.shape_cast %50 : vector<16xf32> to vector<16x1xf32>
    %52 = tpu.reciprocal %51 : vector<16x1xf32> -> vector<16x1xf32>
    %53 = vector.broadcast %52 : vector<16x1xf32> to vector<16x32xf32>
    %54 = arith.mulf %49, %53 : vector<16x32xf32>
    %55 = arith.mulf %54, %6 : vector<16x32xf32>
    %c0_32 = arith.constant 0 : index
    %c1 = arith.constant 1 : index
    %c0_33 = arith.constant 0 : index
    %c0_34 = arith.constant 0 : index
    %56 = vector.load %arg12[%c0_32, %c1, %c0_33, %c0_34] : memref<1x4x16x32xf32, #tpu.memory_space<vmem>>, vector<1x1x16x32xf32>
    %57 = vector.shape_cast %56 : vector<1x1x16x32xf32> to vector<16x32xf32>
    %58 = vector.shape_cast %55 : vector<16x32xf32> to vector<1x1x16x32xf32>
    tpu.vector_store %arg12[%c0_32, %c1, %c0_33, %c0_34], %58 {strides = array<i32>} : memref<1x4x16x32xf32, #tpu.memory_space<vmem>>, vector<1x1x16x32xf32>,
    %cst_35 = arith.constant dense<0.000000e+00> : vector<16x128xf32>
    %59 = tpu.matmul %55, %41, %cst_35 {dimension_numbers = #tpu.dot_dimension_numbers<[1], [0], [0], [1], [0, 0, 1, 1], [], []>} : vector<16x32xf32>, vector<32x128xf32>, vector<16x128xf32> -> vector<16x128xf32>
    %c0_36 = arith.constant 0 : index
    %c128 = arith.constant 128 : index
    %60 = vector.load %arg13[%c0_36, %c128] : memref<16x512xf32, #tpu.memory_space<vmem>>, vector<16x128xf32>
    tpu.vector_store %arg13[%c0_36, %c128], %59 {strides = array<i32>} : memref<16x512xf32, #tpu.memory_space<vmem>>, vector<16x128xf32>,
    %61 = vector.extract_strided_slice %11 {offsets = [0, 256], sizes = [16, 128], strides = [1, 1]} : vector<16x512xf32> to vector<16x128xf32>
    %62 = vector.extract_strided_slice %16 {offsets = [0, 256], sizes = [32, 128], strides = [1, 1]} : vector<32x1024xf32> to vector<32x128xf32>
    %63 = vector.extract_strided_slice %16 {offsets = [0, 768], sizes = [32, 128], strides = [1, 1]} : vector<32x1024xf32> to vector<32x128xf32>
    %cst_37 = arith.constant dense<0.000000e+00> : vector<16x32xf32>
    %64 = tpu.matmul %61, %62, %cst_37 {dimension_numbers = #tpu.dot_dimension_numbers<[1], [1], [0], [0], [0, 0, 1, 0], [], []>} : vector<16x128xf32>, vector<32x128xf32>, vector<16x32xf32> -> vector<16x32xf32>
    %cst_38 = arith.constant 5.000000e-01 : f32
    %65 = vector.broadcast %cst_38 : f32 to vector<16x32xf32>
    %66 = arith.mulf %64, %65 : vector<16x32xf32>
    %cst_39 = arith.constant dense<0xFF800000> : vector<16xf32>
    %67 = vector.multi_reduction <maximumf>, %66, %cst_39 [1] : vector<16x32xf32> to vector<16xf32>
    %68 = vector.shape_cast %67 : vector<16xf32> to vector<16x1xf32>
    %69 = vector.broadcast %68 : vector<16x1xf32> to vector<16x32xf32>
    %70 = arith.subf %66, %69 : vector<16x32xf32>
    %71 = math.exp %70 : vector<16x32xf32>
    %cst_40 = arith.constant dense<0.000000e+00> : vector<16xf32>
    %72 = vector.multi_reduction <add>, %71, %cst_40 [1] : vector<16x32xf32> to vector<16xf32>
    %73 = vector.shape_cast %72 : vector<16xf32> to vector<16x1xf32>
    %74 = tpu.reciprocal %73 : vector<16x1xf32> -> vector<16x1xf32>
    %75 = vector.broadcast %74 : vector<16x1xf32> to vector<16x32xf32>
    %76 = arith.mulf %71, %75 : vector<16x32xf32>
    %77 = arith.mulf %76, %6 : vector<16x32xf32>
    %c0_41 = arith.constant 0 : index
    %c2 = arith.constant 2 : index
    %c0_42 = arith.constant 0 : index
    %c0_43 = arith.constant 0 : index
    %78 = vector.load %arg12[%c0_41, %c2, %c0_42, %c0_43] : memref<1x4x16x32xf32, #tpu.memory_space<vmem>>, vector<1x1x16x32xf32>
    %79 = vector.shape_cast %78 : vector<1x1x16x32xf32> to vector<16x32xf32>
    %80 = vector.shape_cast %77 : vector<16x32xf32> to vector<1x1x16x32xf32>
    tpu.vector_store %arg12[%c0_41, %c2, %c0_42, %c0_43], %80 {strides = array<i32>} : memref<1x4x16x32xf32, #tpu.memory_space<vmem>>, vector<1x1x16x32xf32>,
    %cst_44 = arith.constant dense<0.000000e+00> : vector<16x128xf32>
    %81 = tpu.matmul %77, %63, %cst_44 {dimension_numbers = #tpu.dot_dimension_numbers<[1], [0], [0], [1], [0, 0, 1, 1], [], []>} : vector<16x32xf32>, vector<32x128xf32>, vector<16x128xf32> -> vector<16x128xf32>
    %c0_45 = arith.constant 0 : index
    %c256 = arith.constant 256 : index
    %82 = vector.load %arg13[%c0_45, %c256] : memref<16x512xf32, #tpu.memory_space<vmem>>, vector<16x128xf32>
    tpu.vector_store %arg13[%c0_45, %c256], %81 {strides = array<i32>} : memref<16x512xf32, #tpu.memory_space<vmem>>, vector<16x128xf32>,
    %83 = vector.extract_strided_slice %11 {offsets = [0, 384], sizes = [16, 128], strides = [1, 1]} : vector<16x512xf32> to vector<16x128xf32>
    %84 = vector.extract_strided_slice %16 {offsets = [0, 384], sizes = [32, 128], strides = [1, 1]} : vector<32x1024xf32> to vector<32x128xf32>
    %85 = vector.extract_strided_slice %16 {offsets = [0, 896], sizes = [32, 128], strides = [1, 1]} : vector<32x1024xf32> to vector<32x128xf32>
    %cst_46 = arith.constant dense<0.000000e+00> : vector<16x32xf32>
    %86 = tpu.matmul %83, %84, %cst_46 {dimension_numbers = #tpu.dot_dimension_numbers<[1], [1], [0], [0], [0, 0, 1, 0], [], []>} : vector<16x128xf32>, vector<32x128xf32>, vector<16x32xf32> -> vector<16x32xf32>
    %cst_47 = arith.constant 5.000000e-01 : f32
    %87 = vector.broadcast %cst_47 : f32 to vector<16x32xf32>
    %88 = arith.mulf %86, %87 : vector<16x32xf32>
    %cst_48 = arith.constant dense<0xFF800000> : vector<16xf32>
    %89 = vector.multi_reduction <maximumf>, %88, %cst_48 [1] : vector<16x32xf32> to vector<16xf32>
    %90 = vector.shape_cast %89 : vector<16xf32> to vector<16x1xf32>
    %91 = vector.broadcast %90 : vector<16x1xf32> to vector<16x32xf32>
    %92 = arith.subf %88, %91 : vector<16x32xf32>
    %93 = math.exp %92 : vector<16x32xf32>
    %cst_49 = arith.constant dense<0.000000e+00> : vector<16xf32>
    %94 = vector.multi_reduction <add>, %93, %cst_49 [1] : vector<16x32xf32> to vector<16xf32>
    %95 = vector.shape_cast %94 : vector<16xf32> to vector<16x1xf32>
    %96 = tpu.reciprocal %95 : vector<16x1xf32> -> vector<16x1xf32>
    %97 = vector.broadcast %96 : vector<16x1xf32> to vector<16x32xf32>
    %98 = arith.mulf %93, %97 : vector<16x32xf32>
    %99 = arith.mulf %98, %6 : vector<16x32xf32>
    %c0_50 = arith.constant 0 : index
    %c3 = arith.constant 3 : index
    %c0_51 = arith.constant 0 : index
    %c0_52 = arith.constant 0 : index
    %100 = vector.load %arg12[%c0_50, %c3, %c0_51, %c0_52] : memref<1x4x16x32xf32, #tpu.memory_space<vmem>>, vector<1x1x16x32xf32>
    %101 = vector.shape_cast %100 : vector<1x1x16x32xf32> to vector<16x32xf32>
    %102 = vector.shape_cast %99 : vector<16x32xf32> to vector<1x1x16x32xf32>
    tpu.vector_store %arg12[%c0_50, %c3, %c0_51, %c0_52], %102 {strides = array<i32>} : memref<1x4x16x32xf32, #tpu.memory_space<vmem>>, vector<1x1x16x32xf32>,
    %cst_53 = arith.constant dense<0.000000e+00> : vector<16x128xf32>
    %103 = tpu.matmul %99, %85, %cst_53 {dimension_numbers = #tpu.dot_dimension_numbers<[1], [0], [0], [1], [0, 0, 1, 1], [], []>} : vector<16x32xf32>, vector<32x128xf32>, vector<16x128xf32> -> vector<16x128xf32>
    %c0_54 = arith.constant 0 : index
    %c384 = arith.constant 384 : index
    %104 = vector.load %arg13[%c0_54, %c384] : memref<16x512xf32, #tpu.memory_space<vmem>>, vector<16x128xf32>
    tpu.vector_store %arg13[%c0_54, %c384], %103 {strides = array<i32>} : memref<16x512xf32, #tpu.memory_space<vmem>>, vector<16x128xf32>,
    %c0_55 = arith.constant 0 : index
    %c0_56 = arith.constant 0 : index
    %105 = vector.load %arg13[%c0_55, %c0_56] : memref<16x512xf32, #tpu.memory_space<vmem>>, vector<16x512xf32>
    %c0_57 = arith.constant 0 : index
    %c0_58 = arith.constant 0 : index
    %106 = vector.load %arg8[%c0_57, %c0_58] : memref<512x32xf32, #tpu.memory_space<vmem>>, vector<512x32xf32>
    %cst_59 = arith.constant dense<0.000000e+00> : vector<16x32xf32>
    %107 = tpu.matmul %105, %106, %cst_59 {dimension_numbers = #tpu.dot_dimension_numbers<[1], [0], [0], [1], [0, 0, 1, 1], [], []>} : vector<16x512xf32>, vector<512x32xf32>, vector<16x32xf32> -> vector<16x32xf32>
    %c0_60 = arith.constant 0 : index
    %c0_61 = arith.constant 0 : index
    %108 = vector.load %arg9[%c0_60, %c0_61] : memref<1x32xf32, #tpu.memory_space<vmem>>, vector<1x32xf32>
    %109 = vector.broadcast %108 : vector<1x32xf32> to vector<16x32xf32>
    %110 = arith.addf %107, %109 : vector<16x32xf32>
    %111 = vector.shape_cast %110 : vector<16x32xf32> to vector<1x16x32xf32>
    %c0_62 = arith.constant 0 : index
    %c0_63 = arith.constant 0 : index
    %c0_64 = arith.constant 0 : index
    %112 = vector.load %arg11[%c0_62, %c0_63, %c0_64] : memref<1x16x32xf32, #tpu.memory_space<vmem>>, vector<1x16x32xf32>
    tpu.vector_store %arg11[%c0_62, %c0_63, %c0_64], %111 {strides = array<i32>} : memref<1x16x32xf32, #tpu.memory_space<vmem>>, vector<1x16x32xf32>,
    return
  }
  func.func @transform_0(%arg0: i32, %arg1: i32) -> (i32, i32, i32) {
    %c0_i32 = arith.constant 0 : i32
    %c0_i32_0 = arith.constant 0 : i32
    return %arg0, %arg1, %c0_i32 : i32, i32, i32
  }
  func.func @transform_1(%arg0: i32, %arg1: i32) -> (i32, i32, i32) {
    %c0_i32 = arith.constant 0 : i32
    %c0_i32_0 = arith.constant 0 : i32
    %c0_i32_1 = arith.constant 0 : i32
    return %arg0, %c0_i32, %c0_i32_0 : i32, i32, i32
  }
  func.func @transform_2(%arg0: i32, %arg1: i32) -> (i32, i32) {
    %c0_i32 = arith.constant 0 : i32
    %c0_i32_0 = arith.constant 0 : i32
    %c0_i32_1 = arith.constant 0 : i32
    return %c0_i32, %c0_i32_0 : i32, i32
  }
  func.func @transform_3(%arg0: i32, %arg1: i32) -> (i32, i32) {
    %c0_i32 = arith.constant 0 : i32
    %c0_i32_0 = arith.constant 0 : i32
    %c0_i32_1 = arith.constant 0 : i32
    return %c0_i32, %c0_i32_0 : i32, i32
  }
  func.func @transform_4(%arg0: i32, %arg1: i32) -> (i32, i32) {
    %c0_i32 = arith.constant 0 : i32
    %c0_i32_0 = arith.constant 0 : i32
    %c0_i32_1 = arith.constant 0 : i32
    return %c0_i32, %c0_i32_0 : i32, i32
  }
  func.func @transform_5(%arg0: i32, %arg1: i32) -> (i32, i32) {
    %c0_i32 = arith.constant 0 : i32
    %c0_i32_0 = arith.constant 0 : i32
    %c0_i32_1 = arith.constant 0 : i32
    return %c0_i32, %c0_i32_0 : i32, i32
  }
  func.func @transform_6(%arg0: i32, %arg1: i32) -> (i32, i32) {
    %c0_i32 = arith.constant 0 : i32
    %c0_i32_0 = arith.constant 0 : i32
    %c0_i32_1 = arith.constant 0 : i32
    return %c0_i32, %c0_i32_0 : i32, i32
  }
  func.func @transform_7(%arg0: i32, %arg1: i32) -> (i32, i32) {
    %c0_i32 = arith.constant 0 : i32
    %c0_i32_0 = arith.constant 0 : i32
    %c0_i32_1 = arith.constant 0 : i32
    return %c0_i32, %c0_i32_0 : i32, i32
  }
  func.func @transform_8(%arg0: i32, %arg1: i32) -> (i32, i32, i32) {
    %c0_i32 = arith.constant 0 : i32
    %c0_i32_0 = arith.constant 0 : i32
    return %arg0, %arg1, %c0_i32 : i32, i32, i32
  }
  func.func @transform_9(%arg0: i32, %arg1: i32) -> (i32, i32, i32) {
    %c0_i32 = arith.constant 0 : i32
    %c0_i32_0 = arith.constant 0 : i32
    return %arg0, %arg1, %c0_i32 : i32, i32, i32
  }
  func.func @transform_10(%arg0: i32, %arg1: i32) -> (i32, i32, i32, i32) {
    %c0_i32 = arith.constant 0 : i32
    %c0_i32_0 = arith.constant 0 : i32
    %c0_i32_1 = arith.constant 0 : i32
    return %arg0, %c0_i32, %arg1, %c0_i32_0 : i32, i32, i32, i32
  }
}

</mosaic_0001>

<bundles_post_ra>
// kernel: tpu_custom_call.1
= control target key start
LH: loop header
LB: loop body
LE: loop exit
PB: predicated region body
PF: predicated region fallthrough
CT: control target
= control target key end

     0   :  { %16 = vsyncpa [#allocation4], 0  ;;  %s3812_s0 = inlined_call_operand.vmem [shape: f32[2,32,32], index: 0, kind: input, shape index: {}]   ;;  %s3813_s1 = inlined_call_operand.vmem [shape: f32[2,32,32], index: 1, kind: input, shape index: {}]   ;;  %s3814_s2 = inlined_call_operand.vmem [shape: f32[32,512], index: 2, kind: input, shape index: {}]   ;;  %s3815_s3 = inlined_call_operand.vmem [shape: f32[1,512], index: 3, kind: input, shape index: {}]   ;;  %s3816_s4 = inlined_call_operand.vmem [shape: f32[32,1024], index: 4, kind: input, shape index: {}]   ;;  %s3817_s5 = inlined_call_operand.vmem [shape: f32[1,1024], index: 5, kind: input, shape index: {}]   ;;  %s3818_s6 = inlined_call_operand.vmem [shape: f32[512,32], index: 6, kind: input, shape index: {}]   ;;  %s3819_s7 = inlined_call_operand.vmem [shape: f32[1,32], index: 7, kind: input, shape index: {}]   ;;  %s3820_s8 = inlined_call_operand.vmem [shape: bf16[2,32,32], index: 8, kind: input, shape index: {}]   ;;  %s3821_s9 = inlined_call_operand.hbm [shape: f32[2,32,32], index: 9, kind: output, shape index: {0}]   ;;  %s3822_s10 = inlined_call_operand.hbm [shape: f32[2,4,32,32], index: 10, kind: output, shape index: {1}]  }
   0x1   :  { %18 = vsyncpa [#allocation4 + $0x1], 0 }
   0x2   :  { %19 = vsyncpa [#allocation6], 0 }
   0x3   :  { %21 = vsyncpa [#allocation6 + $0x1], 0  ;;  %s3046_s13 = smov 0   ;;  %s3048_s14 = smov 0  }
   0x4   :  { %s3050_s15 = smov 0   ;;  %s3052_s16 = smov 0  }
   0x5   :  { %s3054_s17 = smov 0   ;;  %s3056_s18 = smov 0  }
   0x6   :  { %s3058_s19 = smov 0   ;;  %s3060_s20 = smov 0  }
   0x7 LB: > { %3829 = sst [smem:[#allocation11_spill]] %s2958_s15  ;;  %s2303_s21 = sadd.s32 4294967295, %s2978_s20   ;;  %s2978_s20 = sphi %s3060_s20, %s27_s20   ;;  %s2974_s19 = sphi %s3058_s19, %s3844_s19   ;;  %s2970_s18 = sphi %s3056_s18, %s3843_s18   ;;  %s2966_s17 = sphi %s3054_s17, %s3842_s17   ;;  %s2962_s16 = sphi %s3052_s16, %s3841_s16   ;;  %s2958_s15 = sphi %s3050_s15, %s3840_s15   ;;  %s2954_s14 = sphi %s3048_s14, %s3846_s14   ;;  %s2950_s13 = sphi %s3046_s13, %s3845_s13  }
   0x8   : > { %3830 = sst [smem:[#allocation12_spill]] %s2970_s18  ;;  %s2304_s22 = sadd.s32 4294967294, %s2978_s20  }
   0x9   : > { %3831 = sst [smem:[#allocation13_spill]] %s2974_s19  ;;  %s36_s23 = sadd.s32 1, %s2970_s18 }
   0xa   : > { %p37_p0 = scmp.ge.s32.totalorder %s36_s23, 2  ;;  %s39_s24 = sadd.s32 1, %s2974_s19 }
   0xb   : > { %p266_p1 = scmp.ne.s32.totalorder %s2958_s15, %s2954_s14  ;;  %p267_p2 = scmp.eq.s32.totalorder %s2303_s21, 3 }
   0xc   : > { %s3848_s23 = smov (%p37_p0, %s36_s23), 0  ;;  %s3850_s24 = smov (!%p37_p0, %s39_s24), %s2974_s19 }
   0xd   : > { %3832 = sst [smem:[#allocation14_spill]] %s3848_s23  ;;  %s252_s25 = ssub.s32 %s2970_s18, %s3848_s23 }
   0xe   : > { %p3097_p3 = por %p267_p2, %p266_p1  ;;  %p41_p4 = scmp.ge.s32.totalorder %s3850_s24, 2 }
   0xf   : > { %p272_p5 = scmp.ne.s32.totalorder %s2954_s14, %s2950_s13  ;;  %p273_p6 = scmp.eq.s32.totalorder %s2304_s22, 3 }
  0x10   : > { %p2307_p7 = scmp.ge.s32.totalorder %s2978_s20, 1  ;;  %s3852_s24 = smov (%p41_p4, %s3850_s24), 0 }
  0x11   : > { %3834 = sst [smem:[#allocation15_spill]] %s3852_s24  ;;  %p3106_p8 = por %p273_p6, %p272_p5 }
  0x12   : > { %p371_p9 = scmp.lt.s32.totalorder %s2978_s20, 5  ;;  %s251_s28 = ssub.s32 %s2974_s19, %s3852_s24 }
  0x13   : > { %s3835_s27 = scalar_select %p3106_p8, 1, 0 }
  0x14   : > { %s256_s29 = sadd.s32 1, %s2958_s15  ;;  %s253_s30 = sor.u32 %s252_s25, %s251_s28 }
  0x15   : > { %3836 = sst [smem:[#allocation16_spill]] %s3835_s27  ;;  %p372_p10 = pnand %p2307_p7, %p371_p9 }
  0x16   : > { %p254_p11 = scmp.eq.s32.totalorder %s253_s30, 0  ;;  %v470_v0 = vld [vmem:[%s3814_s2 + $0x8] sm:$0xff] (!%p372_p10)  ;;  %v469_v2 = vld [vmem:[%s3814_s2] sm:$0xff] (!%p372_p10)  ;;  %s3127_s25 = sshll.u32 (!%p372_p10), %s2962_s16, 1  ;;  %v2980_v7 = vmov (!%p372_p10), 0.0   ;;  %vm507_vm0 = vcmask (!%p372_p10), 261120  }
  0x17   : > { %375 = sbr.rel (%p372_p10) target bundleno = 2389 (0x955), region = 56  ;;  %v474_v1 = vld [vmem:[%s3814_s2 + $0x28] sm:$0xff] (!%p372_p10)  ;;  %p433_p12 = scmp.lt.s32.totalorder (!%p372_p10), %s2966_s17, 1  ;;  %v473_v4 = vld [vmem:[%s3814_s2 + $0x20] sm:$0xff] (!%p372_p10)  ;;  %578 = vmatprep.mubr.f32.mxu0 (!%p372_p10), %v2980_v7  ;;  %655 = vmatprep.mubr.f32.mxu1 (!%p372_p10), %v2980_v7  ;;  %v472_v43 = vld [vmem:[%s3814_s2 + $0x18] sm:$0xff] (!%p372_p10) }
  0x18   : > { %s3115_s11 = scalar_select %p254_p11, %s2958_s15, %s256_s29  }
  0x19   : > { %v2580_v3 = vpack.c.bf16 (!%p372_p10), %v474_v1, %v470_v0  ;;  %v478_v5 = vld [vmem:[%s3814_s2 + $0x48] sm:$0xff] (!%p372_p10)  ;;  %p435_p13 = scmp.lt.s32.totalorder (!%p372_p10), %s3127_s25, 3  ;;  %v2582_v8 = vpack.c.bf16 (!%p372_p10), %v473_v4, %v469_v2  ;;  %v477_v10 = vld [vmem:[%s3814_s2 + $0x40] sm:$0xff] (!%p372_p10)  ;;  %v476_v44 = vld [vmem:[%s3814_s2 + $0x38] sm:$0xff] (!%p372_p10)  ;;  %s2356_s22 = sshll.u32 (!%p372_p10), %s2966_s17, 2 }
  0x1a   : > { %3837 = sst [smem:[#allocation17_spill]] %s3115_s11  ;;  %v482_v6 = vld [vmem:[%s3814_s2 + $0x68] sm:$0xff] (!%p372_p10)  ;;  %v481_v11 = vld [vmem:[%s3814_s2 + $0x60] sm:$0xff] (!%p372_p10)  ;;  %v471_v45 = vld [vmem:[%s3814_s2 + $0x10] sm:$0xff] (!%p372_p10)  ;;  %v2588_v46 = vpack.c.bf16 (!%p372_p10), %v476_v44, %v472_v43  ;;  %s2106_s23 = sadd.s32 (!%p372_p10), %s2356_s22, %s3127_s25 }
  0x1b   : > { %v2584_v9 = vpack.c.bf16 (!%p372_p10), %v482_v6, %v478_v5  ;;  %v669_v12 = vld [vmem:[%s3816_s4 + $0x8] sm:$0xff] (!%p372_p10)  ;;  %2581 = vmatprep.subr.bf16.mxu0 (!%p372_p10), %v2580_v3  ;;  %v2586_v14 = vpack.c.bf16 (!%p372_p10), %v481_v11, %v477_v10  ;;  %v668_v16 = vld [vmem:[%s3816_s4] sm:$0xff] (!%p372_p10)  ;;  %v475_v47 = vld [vmem:[%s3814_s2 + $0x30] sm:$0xff] (!%p372_p10)  ;;  %s2981_s29 = smov (!%p372_p10), [#allocation3]  }
  0x1c   : > { %v677_v13 = vld [vmem:[%s3816_s4 + $0x48] sm:$0xff] (!%p372_p10)  ;;  %2583 = vmatpush1.bf16.msra.mxu0 (!%p372_p10), %v2582_v8  ;;  %v676_v17 = vld [vmem:[%s3816_s4 + $0x40] sm:$0xff] (!%p372_p10)  ;;  %v480_v48 = vld [vmem:[%s3814_s2 + $0x58] sm:$0xff] (!%p372_p10)  ;;  %v2590_v50 = vpack.c.bf16 (!%p372_p10), %v475_v47, %v471_v45  ;;  %2589 = vmatprep.subr.bf16.mxu1 (!%p372_p10), %v2588_v46 }
  0x1d   : > { %2585 = vmatprep.subr.bf16.mxu0 (!%p372_p10), %v2584_v9  ;;  %v2596_v15 = vpack.c.bf16 (!%p372_p10), %v677_v13, %v669_v12  ;;  %v685_v18 = vld [vmem:[%s3816_s4 + $0x88] sm:$0xff] (!%p372_p10)  ;;  %v2598_v21 = vpack.c.bf16 (!%p372_p10), %v676_v17, %v668_v16  ;;  %v684_v23 = vld [vmem:[%s3816_s4 + $0x80] sm:$0xff] (!%p372_p10)  ;;  %v484_v49 = vld [vmem:[%s3814_s2 + $0x78] sm:$0xff] (!%p372_p10)  ;;  %v487_v16 = vlaneseq (!%p372_p10) }
  0x1e   : > { %s3149_s28 = scalar_select %p433_p12, %s2966_s17, 1  ;;  %v693_v19 = vld [vmem:[%s3816_s4 + $0xc8] sm:$0xff]  ;;  %v692_v24 = vld [vmem:[%s3816_s4 + $0xc0] sm:$0xff]  ;;  %v2592_v51 = vpack.c.bf16 %v484_v49, %v480_v48  ;;  %v479_v52 = vld [vmem:[%s3814_s2 + $0x50] sm:$0xff]  ;;  %2591 = vmatpush1.bf16.msra.mxu1 %v2590_v50 }
  0x1f   : > { %s436_s12 = scalar_select %p435_p13, %s3127_s25, 3  ;;  %v2600_v22 = vpack.c.bf16 %v693_v19, %v685_v18  ;;  %v673_v25 = vld [vmem:[%s3816_s4 + $0x28] sm:$0xff]  ;;  %v2602_v28 = vpack.c.bf16 %v692_v24, %v684_v23  ;;  %v672_v30 = vld [vmem:[%s3816_s4 + $0x20] sm:$0xff]  ;;  %v483_v53 = vld [vmem:[%s3814_s2 + $0x70] sm:$0xff]  ;;  %v3353_v17 = vshrl.u32 %v487_v16, 7 }
  0x20   : > { %s2311_s16 = sshll.u32 %s3149_s28, 2  ;;  %2587 = vmatpush1.bf16.msra.mxu0 %v2586_v14  ;;  %s2363_s19 = sshll.u32 %s3149_s28, 5  ;;  %v681_v26 = vld [vmem:[%s3816_s4 + $0x68] sm:$0xff]  ;;  %v680_v31 = vld [vmem:[%s3816_s4 + $0x60] sm:$0xff]  ;;  %v671_v54 = vld [vmem:[%s3816_s4 + $0x18] sm:$0xff]  ;;  %v2594_v56 = vpack.c.bf16 %v483_v53, %v479_v52  ;;  %2593 = vmatprep.subr.bf16.mxu1 %v2592_v51 }
  0x21   : > { %s3159_s18 = sadd.s32 %s2311_s16, %s436_s12  ;;  %2597 = vmatprep.subr.bf16.mxu0 %v2596_v15  ;;  %s446_s28 = scalar_lea.vmem %s3813_s1, %s2363_s19  ;;  %v2612_v29 = vpack.c.bf16 %v681_v26, %v673_v25  ;;  %v689_v32 = vld [vmem:[%s3816_s4 + $0xa8] sm:$0xff]  ;;  %v2614_v35 = vpack.c.bf16 %v680_v31, %v672_v30  ;;  %v688_v37 = vld [vmem:[%s3816_s4 + $0xa0] sm:$0xff]  ;;  %v679_v55 = vld [vmem:[%s3816_s4 + $0x58] sm:$0xff]  ;;  %v489_v18 = vsub.s32 0, %v3353_v17  ;;  %v493_v26 = vsub.s32 1, %v3353_v17 }
  0x22   : > { %s2312_s24 = sshll.u32 %s3159_s18, 3  ;;  %v697_v33 = vld [vmem:[%s3816_s4 + $0xe8] sm:$0xff]  ;;  %v3215_v34 = vld [vmem:[%s446_s28] sm:$0xff]  ;;  %v3231_v41 = vld [vmem:[%s446_s28 + $0x10] sm:$0xff]  ;;  %v2604_v57 = vpack.c.bf16 %v679_v55, %v671_v54  ;;  %2595 = vmatpush1.bf16.msra.mxu1 %v2594_v56  ;;  %v724_v43 = vsub.s32 5, %v3353_v17  ;;  %s2317_s27 = sshll.u32 %s3159_s18, 2 }
  0x23   : > { %s440_s15 = scalar_lea.vmem %s3812_s0, %s2312_s24  ;;  %v2616_v36 = vpack.c.bf16 %v697_v33, %v689_v32  ;;  %v696_v38 = vld [vmem:[%s3816_s4 + $0xe0] sm:$0xff]  ;;  %v3226_v39 = vld [vmem:[%s446_s28 + $0x8] sm:$0xff]  ;;  %v3236_v42 = vld [vmem:[%s446_s28 + $0x18] sm:$0xff]  ;;  %s3420_s28 = sand.u32 1, %s2954_s14  }
  0x24   : > { %v3177_v20 = vld [vmem:[%s440_s15] sm:$0xff]  ;;  %v3195_v27 = vld [vmem:[%s440_s15 + $0x8] sm:$0xff]  ;;  %v2618_v40 = vpack.c.bf16 %v696_v38, %v688_v37  ;;  %v670_v58 = vld [vmem:[%s3816_s4 + $0x10] sm:$0xff]  ;;  %2605 = vmatprep.subr.bf16.mxu1 %v2604_v57  ;;  %s455_s30 = scalar_lea.vmem %s3820_s8, %s2317_s27  ;;  %s2309_s11 = sshll.u32 %s3420_s28, 6 }
  0x25   : > { %2318 = vmatmul.mubr.msk.f32.vlgmr.msra.gmra.mrb[0].mxu0 %vm507_vm0, %v3177_v20  ;;  %v678_v59 = vld [vmem:[%s3816_s4 + $0x50] sm:$0xff]  ;;  %v687_v60 = vld [vmem:[%s3816_s4 + $0x98] sm:$0xff]  ;;  %2320 = vmatmul.mubr.msk.f32.vlgmr.msra.gmra.mrb[0].mxu1 %vm507_vm0, %v3177_v20  ;;  %v3359_v19 = vld [vmem:[%s3815_s3] sm:$0xf]  ;;  %s3446_s18 = scalar_lea.vmem [#allocation5], %s2309_s11  ;;  %s2308_s11 = sshll.u32 %s3420_s28, 4 }
  0x26   : > { %2599 = vmatpush1.bf16.msra.mxu0 %v2598_v21  ;;  %584 = vmatprep.mubr.f32.mxu0 %v2980_v7  ;;  %v695_v61 = vld [vmem:[%s3816_s4 + $0xd8] sm:$0xff]  ;;  %v2606_v62 = vpack.c.bf16 %v678_v59, %v670_v58  ;;  %v686_v0 = vld [vmem:[%s3816_s4 + $0x90] sm:$0xff]  ;;  %v490_v20 = vrot.slane %v3359_v19, %v489_v18  ;;  %v3367_v25 = vld [vmem:[%s3817_s5] sm:$0xff]  ;;  %v494_v56 = vrot.slane %v3359_v19, %v493_v26  ;;  %s424_s15 = scalar_lea.vmem [#allocation3], %s2308_s11  ;;  %s2357_s19 = sshll.u32 %s2106_s23, 7 }
  0x27   : > { %2601 = vmatprep.subr.bf16.mxu0 %v2600_v22  ;;  %v2608_v63 = vpack.c.bf16 %v695_v61, %v687_v60  ;;  %v694_v1 = vld [vmem:[%s3816_s4 + $0xd0] sm:$0xff]  ;;  %v675_v2 = vld [vmem:[%s3816_s4 + $0x38] sm:$0xff]  ;;  %661 = vmatprep.mubr.f32.mxu1 %v2980_v7  ;;  %v709_v30 = vrot.slane %v3367_v25, %v493_v26  ;;  %v725_v53 = vrot.slane %v3367_v25, %v724_v43  ;;  %s2109_s24 = sshll.u32 %s424_s15, 4  ;;  %s3734_s16 = scalar_lea.hbm %s3821_s9, %s2357_s19  ;;  %s3736_s24 = int_to_ptr.vmem [resolvable:$true] %s2109_s24 }
  0x28   : > { %v683_v3 = vld [vmem:[%s3816_s4 + $0x78] sm:$0xff]  ;;  %2607 = vmatpush1.bf16.msra.mxu1 %v2606_v62  ;;  %v2610_v4 = vpack.c.bf16 %v694_v1, %v686_v0  ;;  %v674_v6 = vld [vmem:[%s3816_s4 + $0x30] sm:$0xff]  ;;  %s2089_s27 = scalar_lea.sflag [#allocation4], %s3420_s28  ;;  %s2880_s22 = scalar_lea.vmem %s3736_s24, 256 }
  0x29   : > { %2319 = vmatmul.mubr.msk.f32.gmra.mrb[2].mxu0 %vm507_vm0, %v3195_v27  ;;  %2609 = vmatprep.subr.bf16.mxu1 %v2608_v63  ;;  %v2620_v5 = vpack.c.bf16 %v683_v3, %v675_v2  ;;  %v682_v8 = vld [vmem:[%s3816_s4 + $0x70] sm:$0xff]  ;;  %v691_v9 = vld [vmem:[%s3816_s4 + $0xb8] sm:$0xff]  ;;  %p2881_p0 = scmp.ne.s32.totalorder %s3736_s24, %s2880_s22 }
  0x2a   : > { %2603 = vmatpush1.bf16.msra.mxu0 %v2602_v28  ;;  %818 = vmatprep.mubr.f32.mxu0 %v2980_v7  ;;  %v699_v10 = vld [vmem:[%s3816_s4 + $0xf8] sm:$0xff]  ;;  %v2622_v11 = vpack.c.bf16 %v682_v8, %v674_v6  ;;  %v690_v13 = vld [vmem:[%s3816_s4 + $0xb0] sm:$0xff]  ;;  %v705_v28 = vrot.slane %v3367_v25, %v489_v18 }
  0x2b   : > { %2613 = vmatprep.subr.bf16.mxu0 %v2612_v29  ;;  %2321 = vmatmul.mubr.msk.f32.gmra.mrb[2].mxu1 %vm507_vm0, %v3195_v27  ;;  %v2624_v12 = vpack.c.bf16 %v699_v10, %v691_v9  ;;  %v698_v14 = vld [vmem:[%s3816_s4 + $0xf0] sm:$0xff]  ;;  %p2882_p1 = pnand %p2881_p0, %p3097_p3 }
  0x2c   : > { %2611 = vmatpush1.bf16.msra.mxu1 %v2610_v4  ;;  %907 = vmatprep.mubr.f32.mxu1 %v2980_v7  ;;  %v2626_v15 = vpack.c.bf16 %v698_v14, %v690_v13 }
  0x2d   : > { %2322 = vmatmul.mubr.msk.f32.vlgmr.msra.gmra.mrb[4].mxu0 %vm507_vm0, %v3215_v34  ;;  %2621 = vmatprep.subr.bf16.mxu1 %v2620_v5  ;;  %p2883_p2 = pneg %p2882_p1 }
  0x2e   : > { %824 = vmatprep.mubr.f32.mxu0 %v2980_v7  ;;  %2615 = vmatpush1.bf16.msra.mxu0 %v2614_v35 }
  0x2f   : > { %2617 = vmatprep.subr.bf16.mxu0 %v2616_v36  ;;  %2326 = vmatmul.mubr.msk.f32.vlgmr.msra.gmra.mrb[4].mxu1 %vm507_vm0, %v3215_v34 }
  0x30   : > { %913 = vmatprep.mubr.f32.mxu1 %v2980_v7  ;;  %2623 = vmatpush1.bf16.msra.mxu1 %v2622_v11 }
  0x31   : > { %2323 = vmatmul.mubr.msk.f32.gmra.mrb[6].mxu0 %vm507_vm0, %v3226_v39  ;;  %2625 = vmatprep.subr.bf16.mxu1 %v2624_v12 }
  0x32   : > { %830 = vmatprep.mubr.f32.mxu0 %v2980_v7  ;;  %2619 = vmatpush1.bf16.msra.mxu0 %v2618_v40 }
  0x33   : > { %2327 = vmatmul.mubr.msk.f32.gmra.mrb[6].mxu1 %vm507_vm0, %v3226_v39 }
  0x34   : > { %919 = vmatprep.mubr.f32.mxu1 %v2980_v7  ;;  %2627 = vmatpush1.bf16.msra.mxu1 %v2626_v15 }
  0x35   : > { %2324 = vmatmul.mubr.msk.f32.gmra.mrb[8].mxu0 %vm507_vm0, %v3231_v41 }
  0x36   : > { %836 = vmatprep.mubr.f32.mxu0 %v2980_v7 }
  0x37   : > { %2328 = vmatmul.mubr.msk.f32.gmra.mrb[8].mxu1 %vm507_vm0, %v3231_v41 }
  0x38   : > { %925 = vmatprep.mubr.f32.mxu1 %v2980_v7 }
  0x39   : > { %2325 = vmatmul.mubr.msk.f32.gmra.mrb[10].mxu0 %vm507_vm0, %v3236_v42 }
  0x3a   : > { %996 = vmatprep.mubr.f32.mxu0 %v2980_v7 }
  0x3b   : > { %2329 = vmatmul.mubr.msk.f32.gmra.mrb[10].mxu1 %vm507_vm0, %v3236_v42 }
  0x3c   : > { %1085 = vmatprep.mubr.f32.mxu1 %v2980_v7 }
  0x3d   : > { %2330 = vmatmul.mubr.msk.f32.vlgmr.msra.gmra.mrb[12].mxu0 %vm507_vm0, %v3215_v34 }
  0x3e   : > { %1002 = vmatprep.mubr.f32.mxu0 %v2980_v7 }
  0x3f   : > { %2334 = vmatmul.mubr.msk.f32.vlgmr.msra.gmra.mrb[12].mxu1 %vm507_vm0, %v3215_v34 }
  0x40   : > { %1091 = vmatprep.mubr.f32.mxu1 %v2980_v7 }
  0x41   : > { %2331 = vmatmul.mubr.msk.f32.gmra.mrb[14].mxu0 %vm507_vm0, %v3226_v39 }
  0x42   : > { %1008 = vmatprep.mubr.f32.mxu0 %v2980_v7 }
  0x43   : > { %2335 = vmatmul.mubr.msk.f32.gmra.mrb[14].mxu1 %vm507_vm0, %v3226_v39 }
  0x44   : > { %1097 = vmatprep.mubr.f32.mxu1 %v2980_v7 }
  0x45   : > { %2332 = vmatmul.mubr.msk.f32.gmra.mrb[16].mxu0 %vm507_vm0, %v3231_v41 }
  0x46   : > { %1014 = vmatprep.mubr.f32.mxu0 %v2980_v7 }
  0x47   : > { %2336 = vmatmul.mubr.msk.f32.gmra.mrb[16].mxu1 %vm507_vm0, %v3231_v41  ;;  %v720_v41 = vsub.s32 4, %v3353_v17 }
  0x48   : > { %1103 = vmatprep.mubr.f32.mxu1 %v2980_v7 }
  0x49   : > { %2333 = vmatmul.mubr.msk.f32.gmra.mrb[18].mxu0 %vm507_vm0, %v3236_v42  ;;  %v721_v50 = vrot.slane %v3367_v25, %v720_v41 }
  0x4b   : > { %2337 = vmatmul.mubr.msk.f32.gmra.mrb[18].mxu1 %vm507_vm0, %v3236_v42 }
  0xf8   : > { %v580_v21 = vpop.f32.mrb[0].mxu0 }
  0xf9   : > { %v581_v22 = vadd.f32 %v580_v21, %v490_v20  ;;  %v582_v23 = vpop.f32.mrb[1].mxu0 }
  0xfa   : > { %v583_v0 = vadd.f32 %v582_v23, %v494_v56 }
  0xfb   : > { %2500 = vmatprep.mubr.f32.mxu0 %v581_v22 }
  0xfc   : > { %v586_v7 = vpop.f32.mrb[2].mxu0 }
  0xfd   : > { %v3362_v24 = vpop.f32.mrb[3].mxu0  ;;  %v587_v62 = vadd.f32 %v586_v7, %v490_v20 }
  0xfe   : > { %v589_v13 = vadd.f32 %v3362_v24, %v494_v56 }
 0x100   : > { %v820_v27 = vpop.f32.mrb[4].mxu0 }
 0x101   : > { %v822_v29 = vpop.f32.mrb[5].mxu0  ;;  %v821_v32 = vadd.f32 %v820_v27, %v705_v28 }
 0x102   : > { %v823_v35 = vadd.f32 %v822_v29, %v709_v30 }
 0x104   : > { %v826_v31 = vpop.f32.mrb[6].mxu0 }
 0x105   : > { %v827_v33 = vadd.f32 %v826_v31, %v705_v28  ;;  %v828_v34 = vpop.f32.mrb[7].mxu0 }
 0x106   : > { %v829_v36 = vadd.f32 %v828_v34, %v709_v30 }
 0x107   : > { %v2628_v37 = vpack.c.bf16 %v827_v33, %v821_v32 }
 0x108   : > { %v2644_v38 = vpack.c.bf16 %v829_v36, %v823_v35  ;;  %v832_v39 = vpop.f32.mrb[8].mxu0 }
 0x109   : > { %v834_v40 = vpop.f32.mrb[9].mxu0  ;;  %2629 = vmatprep.subr.bf16.mxu0 %v2628_v37  ;;  %v833_v44 = vadd.f32 %v832_v39, %v705_v28 }
 0x10a   : > { %2631 = vmatpush3.bf16.xpose.msra.mxu0 %v2628_v37  ;;  %v835_v47 = vadd.f32 %v834_v40, %v709_v30 }
 0x10c   : > { %v838_v42 = vpop.f32.mrb[10].mxu0 }
 0x10d   : > { %v839_v45 = vadd.f32 %v838_v42, %v705_v28  ;;  %v840_v46 = vpop.f32.mrb[11].mxu0 }
 0x10e   : > { %v841_v48 = vadd.f32 %v840_v46, %v709_v30 }
 0x10f   : > { %v2632_v49 = vpack.c.bf16 %v839_v45, %v833_v44 }
 0x110   : > { %v2648_v51 = vpack.c.bf16 %v841_v48, %v835_v47  ;;  %v998_v52 = vpop.f32.mrb[12].mxu0  ;;  %v3403_v48 = vpop.f32.mrb[0].mxu1 }
 0x111   : > { %2633 = vmatprep.subr.bf16.mxu0 %v2632_v49  ;;  %v1000_v54 = vpop.f32.mrb[13].mxu0  ;;  %v999_v55 = vadd.f32 %v998_v52, %v721_v50 }
 0x112   : > { %2635 = vmatpush3.bf16.xpose.msra.mxu0 %v2632_v49  ;;  %v1001_v57 = vadd.f32 %v1000_v54, %v725_v53  ;;  %v659_v49 = vpop.f32.mrb[1].mxu1 }
 0x113   : > { %2645 = vmatprep.subr.bf16.mxu0 %v2644_v38 }
 0x114   : > { %v1004_v58 = vpop.f32.mrb[14].mxu0 }
 0x115   : > { %v1005_v59 = vadd.f32 %v1004_v58, %v721_v50  ;;  %v1006_v60 = vpop.f32.mrb[15].mxu0 }
 0x116   : > { %v1007_v61 = vadd.f32 %v1006_v60, %v725_v53 }
 0x117   : > { %v2636_v63 = vpack.c.bf16 %v1005_v59, %v999_v55  ;;  %v497_v59 = vsub.s32 2, %v3353_v17 }
 0x118   : > { %v3377_v1 = vpack.c.bf16 %v1007_v61, %v1001_v57  ;;  %v1010_v2 = vpop.f32.mrb[16].mxu0  ;;  %v501_v57 = vsub.s32 3, %v3353_v17 }
 0x119   : > { %2501 = vmatmul.mubr.f32.vlgmr.msra.gmra.mrb[20].mxu0 %v587_v62  ;;  %v1012_v3 = vpop.f32.mrb[17].mxu0  ;;  %2637 = vmatprep.subr.bf16.mxu1 %v2636_v63  ;;  %v1011_v5 = vadd.f32 %v1010_v2, %v721_v50  ;;  %v728_v2 = vsub.s32 6, %v3353_v17 }
 0x11a   : > { %2647 = vmatpush3.bf16.xpose.msra.mxu0 %v2644_v38  ;;  %2522 = vmatprep.mubr.f32.mxu0 %v583_v0  ;;  %v1013_v4 = vadd.f32 %v1012_v3, %v725_v53  ;;  %v502_v61 = vrot.slane %v3359_v19, %v501_v57  ;;  %v717_v0 = vrot.slane %v3367_v25, %v501_v57 }
 0x11b   : > { %2649 = vmatprep.subr.bf16.mxu0 %v2648_v51  ;;  %2639 = vmatpush3.bf16.msra.mxu1 %v2636_v63  ;;  %v713_v63 = vrot.slane %v3367_v25, %v497_v59 }
 0x11c   : > { %v1016_v6 = vpop.f32.mrb[18].mxu0 }
 0x11d   : > { %v1017_v8 = vadd.f32 %v1016_v6, %v721_v50  ;;  %v1018_v9 = vpop.f32.mrb[19].mxu0  ;;  %v3405_v50 = vpop.f32.mrb[2].mxu1 }
 0x11e   : > { %v1019_v10 = vadd.f32 %v1018_v9, %v725_v53 }
 0x11f   : > { %v2640_v11 = vpack.c.bf16 %v1017_v8, %v1011_v5 }
 0x120   : > { %v3379_v12 = vpack.c.bf16 %v1019_v10, %v1013_v4  ;;  %v3415_v4 = vadd.f32 %v659_v49, %v502_v61 }
 0x121   : > { %2641 = vmatprep.subr.bf16.mxu1 %v2640_v11 }
 0x122   : > { %2651 = vmatpush3.bf16.xpose.msra.mxu0 %v2648_v51  ;;  %2643 = vmatpush3.bf16.msra.mxu1 %v2640_v11  ;;  %v665_v51 = vpop.f32.mrb[3].mxu1 }
 0x123   : > { %2653 = vmatprep.subr.bf16.mxu1 %v3377_v1  ;;  %v909_v52 = vpop.f32.mrb[4].mxu1  ;;  %v3417_v5 = vadd.f32 %v665_v51, %v502_v61  ;;  %v2365_v51 = vld [vmem:[%s455_s30] sm:$0xff]   ;;  %s2884_s30 = sshll.u32 %s2981_s29, 4  ;;  %s2885_s30 = int_to_ptr.vmem [resolvable:$false] %s2884_s30 }
 0x124   : > { %v911_v53 = vpop.f32.mrb[5].mxu1  ;;  %v910_v8 = vadd.f32 %v909_v52, %v713_v63  ;;  %v3438_v52 = vunpack.c.l.bf16 %v2365_v51  ;;  %s2886_s11 = scalar_lea.vmem %s2885_s30, 512  ;;  %p2887_p4 = scmp.lt.s32.totalorder %s3736_s24, %s2885_s30 }
 0x125   : > { %v915_v54 = vpop.f32.mrb[6].mxu1  ;;  %v912_v9 = vadd.f32 %v911_v53, %v717_v0  ;;  %p2888_p5 = scmp.lt.s32.totalorder %s2886_s11, %s2880_s22 }
 0x126   : > { %v917_v55 = vpop.f32.mrb[7].mxu1  ;;  %v916_v10 = vadd.f32 %v915_v54, %v713_v63 }
 0x127   : > { %v921_v56 = vpop.f32.mrb[8].mxu1  ;;  %v918_v11 = vadd.f32 %v917_v55, %v717_v0  ;;  %v3442_v55 = vunpack.c.h.bf16 %v2365_v51  ;;  %p2889_p6 = por %p2888_p5, %p2887_p4 }
 0x128   : > { %v923_v58 = vpop.f32.mrb[9].mxu1 }
 0x129   : > { %2523 = vmatmul.mubr.f32.vlgmr.msra.gmra.mrb[22].mxu0 %v589_v13  ;;  %v927_v60 = vpop.f32.mrb[10].mxu1  ;;  %v922_v13 = vadd.f32 %v921_v56, %v713_v63  ;;  %p2890_p7 = pnand %p2889_p6, %p2883_p2 }
 0x12a   : > { %v929_v62 = vpop.f32.mrb[11].mxu1 }
 0x12b   : > { %v1087_v3 = vpop.f32.mrb[12].mxu1 }
 0x12c   : > { %v1089_v6 = vpop.f32.mrb[13].mxu1 }
 0x1ec   : > { %v2502_v14 = vpop.f32.mrb[20].mxu0 }
 0x1ed   : > { %v1176_v15 = vpop.f32.mrb[21].mxu0  ;;  %v1186_v18 = vmul.f32 0.5, %v2502_v14  ;;  %v924_v14 = vadd.f32 %v923_v58, %v717_v0 }
 0x1ee   : > { %v1185_v16 = vmul.f32 0.5, %v1176_v15  ;;  %v928_v15 = vadd.f32 %v927_v60, %v713_v63 }
 0x1ef   : > { %v1190_v21 = vsel %vm507_vm0, %v1186_v18, -inf }
 0x1f0   : > { %v1187_v20 = vsel %vm507_vm0, %v1185_v16, -inf }
 0x1f1   : > { %1188 = vmax.xlane.f32.xlu0 %v1187_v20  ;;  %v3422_v20 = vpack.c.bf16 %v916_v10, %v910_v8 }
 0x1f5   : > { %1191 = vmax.xlane.f32.xlu0 %v1190_v21  ;;  %v3424_v21 = vpack.c.bf16 %v918_v11, %v912_v9 }
 0x1fc   : > { %v2524_v22 = vpop.f32.mrb[22].mxu0 }
 0x1fd   : > { %v1362_v23 = vpop.f32.mrb[23].mxu0  ;;  %v1372_v26 = vmul.f32 0.5, %v2524_v22  ;;  %v729_v22 = vrot.slane %v3367_v25, %v728_v2  ;;  %v498_v2 = vrot.slane %v3359_v19, %v497_v59 }
 0x1fe   : > { %v1371_v7 = vmul.f32 0.5, %v1362_v23  ;;  %v732_v23 = vsub.s32 7, %v3353_v17 }
 0x1ff   : > { %v1376_v24 = vsel %vm507_vm0, %v1372_v26, -inf  ;;  %v664_v17 = vadd.f32 %v3405_v50, %v498_v2 }
 0x200   : > { %v1373_v27 = vsel %vm507_vm0, %v1371_v7, -inf }
 0x201   : > { %1374 = vmax.xlane.f32.xlu1 %v1373_v27 }
 0x205   : > { %1377 = vmax.xlane.f32.xlu1 %v1376_v24 }
 0x27e   : > { %v1189_v28 = vpop.xlane.xlu0 %1188 }
 0x27f   : > { %v1193_v29 = vsub.f32 %v1185_v16, %v1189_v28  ;;  %v930_v16 = vadd.f32 %v929_v62, %v717_v0  ;;  %v1088_v28 = vadd.f32 %v1087_v3, %v729_v22 }
 0x281   : > { %v1195_v30 = vmul.f32 1.442695, %v1193_v29  ;;  %v3430_v27 = vpack.c.bf16 %v930_v16, %v924_v14 }
 0x282   : > { %v1192_v31 = vpop.xlane.xlu0 %1191 }
 0x283   : > { %2848 = vpow2.f32 %v1195_v30  ;;  %v1194_v32 = vsub.f32 %v1186_v18, %v1192_v31  ;;  %v1093_v18 = vpop.f32.mrb[14].mxu1 }
 0x284   : > { %v1094_v29 = vadd.f32 %v1093_v18, %v729_v22 }
 0x285   : > { %v1197_v33 = vmul.f32 1.442695, %v1194_v32  ;;  %v733_v32 = vrot.slane %v3367_v25, %v732_v23 }
 0x287   : > { %2850 = vpow2.f32 %v1197_v33  ;;  %v2668_v33 = vpack.c.bf16 %v1094_v29, %v1088_v28 }
 0x289   : > { %2669 = vmatprep.subr.bf16.mxu0 %v2668_v33 }
 0x28a   : > { %2671 = vmatpush3.bf16.msra.mxu0 %v2668_v33 }
 0x28d   : > { %v3387_v34 = vpop.eup %2848 }
 0x28e   : > { %v1375_v35 = vpop.xlane.xlu1 %1374  ;;  %v1199_v36 = vsel %vm507_vm0, %v3387_v34, 0.0 }
 0x28f   : > { %v1379_v37 = vsub.f32 %v1371_v7, %v1375_v35  ;;  %1200 = vadd.xlane.f32.xlu0 %v1199_v36  ;;  %v1095_v7 = vpop.f32.mrb[15].mxu1 }
 0x290   : > { %v1099_v24 = vpop.f32.mrb[16].mxu1 }
 0x291   : > { %v3391_v38 = vpop.eup %2850  ;;  %v1381_v39 = vmul.f32 1.442695, %v1379_v37  ;;  %v1101_v30 = vpop.f32.mrb[17].mxu1  ;;  %v1100_v35 = vadd.f32 %v1099_v24, %v729_v22 }
 0x292   : > { %v1378_v40 = vpop.xlane.xlu1 %1377  ;;  %v1202_v41 = vsel %vm507_vm0, %v3391_v38, 0.0  ;;  %v1105_v31 = vpop.f32.mrb[18].mxu1 }
 0x293   : > { %2852 = vpow2.f32 %v1381_v39  ;;  %v1380_v42 = vsub.f32 %v1372_v26, %v1378_v40  ;;  %1203 = vadd.xlane.f32.xlu1 %v1202_v41  ;;  %v3428_v26 = vpack.c.bf16 %v928_v15, %v922_v13  ;;  %v1106_v36 = vadd.f32 %v1105_v31, %v729_v22 }
 0x294   : > { %v1090_v39 = vadd.f32 %v1089_v6, %v733_v32  ;;  %v1096_v40 = vadd.f32 %v1095_v7, %v733_v32 }
 0x295   : > { %v1383_v43 = vmul.f32 1.442695, %v1380_v42  ;;  %v2672_v37 = vpack.c.bf16 %v1106_v36, %v1100_v35  ;;  %v1102_v42 = vadd.f32 %v1101_v30, %v733_v32 }
 0x296   : > { %v2684_v41 = vpack.c.bf16 %v1096_v40, %v1090_v39 }
 0x297   : > { %2854 = vpow2.f32 %v1383_v43  ;;  %2673 = vmatprep.subr.bf16.mxu0 %v2672_v37  ;;  %v1107_v43 = vpop.f32.mrb[19].mxu1 }
 0x298   : > { %2675 = vmatpush3.bf16.msra.mxu0 %v2672_v37 }
 0x299   : > { %2677 = vmatprep.subr.bf16.mxu0 %v3424_v21 }
 0x29d   : > { %v3395_v44 = vpop.eup %2852 }
 0x29e   : > { %v1385_v45 = vsel %vm507_vm0, %v3395_v44, 0.0 }
 0x29f   : > { %1386 = vadd.xlane.f32.xlu0 %v1385_v45  ;;  %v1108_v45 = vadd.f32 %v1107_v43, %v733_v32 }
 0x2a1   : > { %v3399_v46 = vpop.eup %2854 }
 0x2a2   : > { %v1388_v47 = vsel %vm507_vm0, %v3399_v46, 0.0 }
 0x2a3   : > { %1389 = vadd.xlane.f32.xlu1 %v1388_v47  ;;  %v2688_v47 = vpack.c.bf16 %v1108_v45, %v1102_v42 }
 0x31c   : > { %v1201_v25 = vpop.xlane.xlu0 %1200 }
 0x31d   : > { %2856 = vrcp.f32 %v1201_v25 }
 0x320   : > { %v1204_v49 = vpop.xlane.xlu1 %1203 }
 0x321   : > { %2858 = vrcp.f32 %v1204_v49 }
 0x327   : > { %v2857_v53 = vpop.eup %2856 }
 0x328   : > { %v1207_v54 = vmul.f32 %v2857_v53, %v3387_v34 }
 0x32a   : > { %v1209_v56 = vmul.f32 %v3438_v52, %v1207_v54  ;;  %v1881_v54 = vld [vmem:[%s3818_s6 + $0x80] sm:$0xff] }
 0x32b   : > { %v2859_v57 = vpop.eup %2858 }
 0x32c   : > { %v1208_v58 = vmul.f32 %v2859_v57, %v3391_v38  ;;  %1211 = vst.msk [vmem:[%s3446_s18] sm:$0xff] %vm507_vm0, %v1209_v56  ;;  %2511 = vmatprep.mubr.msk.f32.mxu1 %vm507_vm0, %v1209_v56  ;;  %v1387_v60 = vpop.xlane.xlu0 %1386  ;;  %v1882_v56 = vld [vmem:[%s3818_s6 + $0x88] sm:$0xff] }
 0x32d   : > { %2860 = vrcp.f32 %v1387_v60  ;;  %v2692_v57 = vpack.c.bf16 %v1882_v56, %v1881_v54  ;;  %v1914_v60 = vld [vmem:[%s3818_s6 + $0x188] sm:$0xff] }
 0x32e   : > { %v1210_v34 = vmul.f32 %v3442_v55, %v1208_v58  ;;  %v1913_v58 = vld [vmem:[%s3818_s6 + $0x180] sm:$0xff]  ;;  %v1866_v54 = vld [vmem:[%s3818_s6 + $0x8] sm:$0xff] }
 0x330   : > { %1212 = vst.msk [vmem:[%s3446_s18 + $0x8] sm:$0xff] %vm507_vm0, %v1210_v34  ;;  %v1390_v61 = vpop.xlane.xlu1 %1389  ;;  %2512 = vmatmul.mubr.msk.f32.vlgmr.msra.gmra.mrb[20].mxu1 %vm507_vm0, %v1210_v34  ;;  %v1897_v34 = vld [vmem:[%s3818_s6 + $0x100] sm:$0xff] }
 0x331   : > { %2862 = vrcp.f32 %v1390_v61  ;;  %2655 = vmatpush3.bf16.msra.mxu1 %v3377_v1  ;;  %v2724_v61 = vpack.c.bf16 %v1914_v60, %v1913_v58  ;;  %v1884_v58 = vld [vmem:[%s3818_s6 + $0x98] sm:$0xff] }
 0x332   : > { %2657 = vmatprep.subr.bf16.mxu1 %v3379_v12 }
 0x335   : > { %2659 = vmatpush3.bf16.msra.mxu1 %v3379_v12  ;;  %v658_v12 = vadd.f32 %v3403_v48, %v498_v2 }
 0x336   : > { %2661 = vmatprep.subr.bf16.mxu1 %v3422_v20 }
 0x337   : > { %v2861_v38 = vpop.eup %2860 }
 0x338   : > { %v1393_v62 = vmul.f32 %v2861_v38, %v3395_v44  ;;  %v1898_v38 = vld [vmem:[%s3818_s6 + $0x108] sm:$0xff] }
 0x33a   : > { %v1395_v63 = vmul.f32 %v3438_v52, %v1393_v62  ;;  %v1915_v62 = vld [vmem:[%s3818_s6 + $0x190] sm:$0xff] }
 0x33b   : > { %v2863_v0 = vpop.eup %2862 }
 0x33c   : > { %v1394_v3 = vmul.f32 %v2863_v0, %v3399_v46  ;;  %2340 = vst.msk [vmem:[%s3446_s18 + $0x10] sm:$0xff] %vm507_vm0, %v1395_v63  ;;  %2533 = vmatprep.mubr.msk.f32.mxu1 %vm507_vm0, %v1395_v63  ;;  %v1916_v63 = vld [vmem:[%s3818_s6 + $0x198] sm:$0xff]  ;;  %v2726_v0 = vpack.c.bf16 %v1898_v38, %v1897_v34 }
 0x33d   : > { %v2728_v2 = vpack.c.bf16 %v1916_v63, %v1915_v62  ;;  %v1868_v38 = vld [vmem:[%s3818_s6 + $0x18] sm:$0xff] }
 0x33e   : > { %v1396_v1 = vmul.f32 %v3442_v55, %v1394_v3  ;;  %v1899_v3 = vld [vmem:[%s3818_s6 + $0x110] sm:$0xff] }
 0x340   : > { %2341 = vst.msk [vmem:[%s3446_s18 + $0x18] sm:$0xff] %vm507_vm0, %v1396_v1  ;;  %2534 = vmatmul.mubr.msk.f32.vlgmr.msra.gmra.mrb[22].mxu1 %vm507_vm0, %v1396_v1  ;;  %v1900_v1 = vld [vmem:[%s3818_s6 + $0x118] sm:$0xff] }
 0x341   : > { %2663 = vmatpush3.bf16.xpose.msra.mxu1 %v3422_v20  ;;  %2544 = vmatprep.mubr.f32.mxu1 %v658_v12  ;;  %v1917_v12 = vld [vmem:[%s3818_s6 + $0x1a0] sm:$0xff] }
 0x342   : > { %2665 = vmatprep.subr.bf16.mxu1 %v3428_v26 }
 0x349   : > { %2667 = vmatpush3.bf16.xpose.msra.mxu1 %v3428_v26 }
 0x34a   : > { %2685 = vmatprep.subr.bf16.mxu1 %v2684_v41 }
 0x350   : > { %2545 = vmatmul.mubr.f32.vlgmr.msra.gmra.mrb[24].mxu1 %v664_v17  ;;  %v1918_v17 = vld [vmem:[%s3818_s6 + $0x1a8] sm:$0xff] }
 0x351   : > { %2687 = vmatpush3.bf16.msra.mxu1 %v2684_v41 }
 0x352   : > { %2689 = vmatprep.subr.bf16.mxu1 %v2688_v47 }
 0x355   : > { %2691 = vmatpush3.bf16.msra.mxu1 %v2688_v47 }
 0x356   : > { %2693 = vmatprep.subr.bf16.mxu1 %v2692_v57  ;;  %v1883_v57 = vld [vmem:[%s3818_s6 + $0x90] sm:$0xff] }
 0x403   : > { %v3477_v19 = vpop.f32.mrb[20].mxu1 }
 0x404   : > { %v3479_v44 = vpop.f32.mrb[21].mxu1 }
 0x413   : > { %v3481_v46 = vpop.f32.mrb[22].mxu1 }
 0x414   : > { %v3483_v48 = vpop.f32.mrb[23].mxu1 }
 0x423   : > { %v2546_v59 = vpop.f32.mrb[24].mxu1 }
 0x424   : > { %v1559_v6 = vmul.f32 0.5, %v2546_v59  ;;  %v1549_v8 = vpop.f32.mrb[25].mxu1  ;;  %v2730_v59 = vpack.c.bf16 %v1900_v1, %v1899_v3  ;;  %v1887_v3 = vld [vmem:[%s3818_s6 + $0xb0] sm:$0xff]  ;;  %v1888_v1 = vld [vmem:[%s3818_s6 + $0xb8] sm:$0xff] }
 0x425   : > { %v1558_v9 = vmul.f32 0.5, %v1549_v8  ;;  %v1901_v8 = vld [vmem:[%s3818_s6 + $0x120] sm:$0xff] }
 0x426   : > { %v1563_v10 = vsel %vm507_vm0, %v1559_v6, -inf }
 0x427   : > { %1564 = vmax.xlane.f32.xlu1 %v1563_v10  ;;  %v1560_v50 = vsel %vm507_vm0, %v1558_v9, -inf  ;;  %v1919_v10 = vld [vmem:[%s3818_s6 + $0x1b0] sm:$0xff] }
 0x428   : > { %1561 = vmax.xlane.f32.xlu0 %v1560_v50  ;;  %v1920_v50 = vld [vmem:[%s3818_s6 + $0x1b8] sm:$0xff] }
 0x4b4   : > { %v1565_v11 = vpop.xlane.xlu1 %1564 }
 0x4b5   : > { %v1567_v13 = vsub.f32 %v1559_v6, %v1565_v11  ;;  %v1562_v14 = vpop.xlane.xlu0 %1561  ;;  %v2732_v6 = vpack.c.bf16 %v1918_v17, %v1917_v12  ;;  %v2704_v12 = vpack.c.bf16 %v1888_v1, %v1887_v3  ;;  %v1871_v17 = vld [vmem:[%s3818_s6 + $0x30] sm:$0xff] }
 0x4b6   : > { %v1566_v15 = vsub.f32 %v1558_v9, %v1562_v14  ;;  %v1902_v9 = vld [vmem:[%s3818_s6 + $0x128] sm:$0xff]  ;;  %v1903_v14 = vld [vmem:[%s3818_s6 + $0x130] sm:$0xff] }
 0x4b7   : > { %v1570_v16 = vmul.f32 1.442695, %v1567_v13  ;;  %v2734_v11 = vpack.c.bf16 %v1902_v9, %v1901_v8  ;;  %v2736_v13 = vpack.c.bf16 %v1920_v50, %v1919_v10  ;;  %v1890_v8 = vld [vmem:[%s3818_s6 + $0xc8] sm:$0xff]  ;;  %v1873_v50 = vld [vmem:[%s3818_s6 + $0x40] sm:$0xff] }
 0x4b8   : > { %v1568_v18 = vmul.f32 1.442695, %v1566_v15  ;;  %v1904_v15 = vld [vmem:[%s3818_s6 + $0x138] sm:$0xff] }
 0x4b9   : > { %2864 = vpow2.f32 %v1570_v16  ;;  %v1921_v16 = vld [vmem:[%s3818_s6 + $0x1c0] sm:$0xff] }
 0x4ba   : > { %2866 = vpow2.f32 %v1568_v18  ;;  %v1922_v18 = vld [vmem:[%s3818_s6 + $0x1c8] sm:$0xff] }
 0x4c3   : > { %v2865_v20 = vpop.eup %2864 }
 0x4c4   : > { %v2867_v22 = vpop.eup %2866  ;;  %v1575_v23 = vsel %vm507_vm0, %v2865_v20, 0.0 }
 0x4c5   : > { %1576 = vadd.xlane.f32.xlu1 %v1575_v23  ;;  %v1572_v7 = vsel %vm507_vm0, %v2867_v22, 0.0  ;;  %v1905_v23 = vld [vmem:[%s3818_s6 + $0x140] sm:$0xff] }
 0x4c6   : > { %1573 = vadd.xlane.f32.xlu0 %v1572_v7  ;;  %v1906_v7 = vld [vmem:[%s3818_s6 + $0x148] sm:$0xff] }
 0x552   : > { %v1577_v26 = vpop.xlane.xlu1 %1576 }
 0x553   : > { %2868 = vrcp.f32 %v1577_v26  ;;  %v1574_v24 = vpop.xlane.xlu0 %1573  ;;  %v1923_v26 = vld [vmem:[%s3818_s6 + $0x1d0] sm:$0xff] }
 0x554   : > { %2870 = vrcp.f32 %v1574_v24  ;;  %v1924_v24 = vld [vmem:[%s3818_s6 + $0x1d8] sm:$0xff] }
 0x55d   : > { %v2869_v28 = vpop.eup %2868 }
 0x55e   : > { %v2871_v29 = vpop.eup %2870  ;;  %v1581_v30 = vmul.f32 %v2869_v28, %v2865_v20  ;;  %v2738_v20 = vpack.c.bf16 %v1904_v15, %v1903_v14  ;;  %v2742_v28 = vpack.c.bf16 %v1906_v7, %v1905_v23  ;;  %v1892_v14 = vld [vmem:[%s3818_s6 + $0xd8] sm:$0xff]  ;;  %v1894_v23 = vld [vmem:[%s3818_s6 + $0xe8] sm:$0xff] }
 0x55f   : > { %v1580_v31 = vmul.f32 %v2871_v29, %v2867_v22  ;;  %v2740_v22 = vpack.c.bf16 %v1922_v18, %v1921_v16  ;;  %v2744_v29 = vpack.c.bf16 %v1924_v24, %v1923_v26  ;;  %v1875_v18 = vld [vmem:[%s3818_s6 + $0x50] sm:$0xff]  ;;  %v1877_v24 = vld [vmem:[%s3818_s6 + $0x60] sm:$0xff] }
 0x560   : > { %v1583_v32 = vmul.f32 %v3442_v55, %v1581_v30  ;;  %v1907_v30 = vld [vmem:[%s3818_s6 + $0x150] sm:$0xff] }
 0x561   : > { %v1582_v33 = vmul.f32 %v3438_v52, %v1580_v31  ;;  %v1908_v31 = vld [vmem:[%s3818_s6 + $0x158] sm:$0xff] }
 0x562   : > { %2345 = vst.msk [vmem:[%s3446_s18 + $0x28] sm:$0xff] %vm507_vm0, %v1583_v32 }
 0x563   : > { %2344 = vst.msk [vmem:[%s3446_s18 + $0x20] sm:$0xff] %vm507_vm0, %v1582_v33  ;;  %2555 = vmatprep.mubr.msk.f32.mxu0 %vm507_vm0, %v1582_v33  ;;  %v1926_v33 = vld [vmem:[%s3818_s6 + $0x1e8] sm:$0xff] }
 0x564   : > { %2556 = vmatmul.mubr.msk.f32.vlgmr.msra.gmra.mrb[24].mxu0 %vm507_vm0, %v1583_v32  ;;  %v1925_v32 = vld [vmem:[%s3818_s6 + $0x1e0] sm:$0xff] }
 0x565   : > { %2679 = vmatpush3.bf16.xpose.msra.mxu0 %v3424_v21  ;;  %2566 = vmatprep.mubr.f32.mxu0 %v3415_v4 }
 0x566   : > { %2681 = vmatprep.subr.bf16.mxu0 %v3430_v27 }
 0x56d   : > { %2683 = vmatpush3.bf16.xpose.msra.mxu0 %v3430_v27 }
 0x56e   : > { %2725 = vmatprep.subr.bf16.mxu0 %v2724_v61  ;;  %v2696_v61 = vpack.c.bf16 %v1884_v58, %v1883_v57 }
 0x574   : > { %2567 = vmatmul.mubr.f32.vlgmr.msra.gmra.mrb[26].mxu0 %v3417_v5 }
 0x575   : > { %2727 = vmatpush3.bf16.msra.mxu0 %v2726_v0  ;;  %v1869_v0 = vld [vmem:[%s3818_s6 + $0x20] sm:$0xff] }
 0x576   : > { %2729 = vmatprep.subr.bf16.mxu0 %v2728_v2  ;;  %v1870_v2 = vld [vmem:[%s3818_s6 + $0x28] sm:$0xff] }
 0x579   : > { %2731 = vmatpush3.bf16.msra.mxu0 %v2730_v59  ;;  %v1872_v59 = vld [vmem:[%s3818_s6 + $0x38] sm:$0xff] }
 0x57a   : > { %2733 = vmatprep.subr.bf16.mxu0 %v2732_v6  ;;  %v1889_v6 = vld [vmem:[%s3818_s6 + $0xc0] sm:$0xff]  ;;  %v2706_v9 = vpack.c.bf16 %v1872_v59, %v1871_v17 }
 0x57b   : > { %v2708_v10 = vpack.c.bf16 %v1890_v8, %v1889_v6 }
 0x57d   : > { %2735 = vmatpush3.bf16.msra.mxu0 %v2734_v11  ;;  %v1874_v11 = vld [vmem:[%s3818_s6 + $0x48] sm:$0xff] }
 0x57e   : > { %2737 = vmatprep.subr.bf16.mxu0 %v2736_v13  ;;  %v1891_v13 = vld [vmem:[%s3818_s6 + $0xd0] sm:$0xff]  ;;  %v2710_v15 = vpack.c.bf16 %v1874_v11, %v1873_v50 }
 0x57f   : > { %v2712_v16 = vpack.c.bf16 %v1892_v14, %v1891_v13 }
 0x581   : > { %2739 = vmatpush3.bf16.msra.mxu0 %v2738_v20  ;;  %v1876_v20 = vld [vmem:[%s3818_s6 + $0x58] sm:$0xff] }
 0x582   : > { %2741 = vmatprep.subr.bf16.mxu0 %v2740_v22  ;;  %v1893_v22 = vld [vmem:[%s3818_s6 + $0xe0] sm:$0xff]  ;;  %v2714_v7 = vpack.c.bf16 %v1876_v20, %v1875_v18 }
 0x583   : > { %v2716_v26 = vpack.c.bf16 %v1894_v23, %v1893_v22 }
 0x585   : > { %2743 = vmatpush3.bf16.msra.mxu0 %v2742_v28  ;;  %v1878_v28 = vld [vmem:[%s3818_s6 + $0x68] sm:$0xff] }
 0x586   : > { %2745 = vmatprep.subr.bf16.mxu0 %v2744_v29  ;;  %v1895_v29 = vld [vmem:[%s3818_s6 + $0xf0] sm:$0xff] }
 0x637   : > { %v3502_v35 = vpop.f32.mrb[24].mxu0 }
 0x638   : > { %v3504_v36 = vpop.f32.mrb[25].mxu0 }
 0x647   : > { %v2568_v37 = vpop.f32.mrb[26].mxu0 }
 0x648   : > { %v1746_v39 = vmul.f32 0.5, %v2568_v37  ;;  %v1736_v40 = vpop.f32.mrb[27].mxu0  ;;  %v2746_v37 = vpack.c.bf16 %v1908_v31, %v1907_v30  ;;  %v1896_v30 = vld [vmem:[%s3818_s6 + $0xf8] sm:$0xff]  ;;  %v2718_v31 = vpack.c.bf16 %v1878_v28, %v1877_v24 }
 0x649   : > { %v1745_v41 = vmul.f32 0.5, %v1736_v40  ;;  %v1909_v40 = vld [vmem:[%s3818_s6 + $0x160] sm:$0xff] }
 0x64a   : > { %v1750_v42 = vsel %vm507_vm0, %v1746_v39, -inf  ;;  %2747 = vmatpush3.bf16.msra.mxu0 %v2746_v37  ;;  %v1880_v37 = vld [vmem:[%s3818_s6 + $0x78] sm:$0xff] }
 0x64b   : > { %1751 = vmax.xlane.f32.xlu1 %v1750_v42  ;;  %v1747_v21 = vsel %vm507_vm0, %v1745_v41, -inf  ;;  %v1927_v42 = vld [vmem:[%s3818_s6 + $0x1f0] sm:$0xff] }
 0x64c   : > { %1748 = vmax.xlane.f32.xlu0 %v1747_v21  ;;  %v1928_v21 = vld [vmem:[%s3818_s6 + $0x1f8] sm:$0xff] }
 0x6d8   : > { %v1752_v4 = vpop.xlane.xlu1 %1751 }
 0x6d9   : > { %v1754_v43 = vsub.f32 %v1746_v39, %v1752_v4  ;;  %v1749_v45 = vpop.xlane.xlu0 %1748  ;;  %v2748_v39 = vpack.c.bf16 %v1926_v33, %v1925_v32  ;;  %v2720_v32 = vpack.c.bf16 %v1896_v30, %v1895_v29  ;;  %v1879_v33 = vld [vmem:[%s3818_s6 + $0x70] sm:$0xff] }
 0x6da   : > { %v1753_v27 = vsub.f32 %v1745_v41, %v1749_v45  ;;  %v1910_v41 = vld [vmem:[%s3818_s6 + $0x168] sm:$0xff] }
 0x6db   : > { %v1757_v47 = vmul.f32 1.442695, %v1754_v43  ;;  %v2750_v4 = vpack.c.bf16 %v1910_v41, %v1909_v40  ;;  %2749 = vmatprep.subr.bf16.mxu0 %v2748_v39  ;;  %v2752_v43 = vpack.c.bf16 %v1928_v21, %v1927_v42  ;;  %v2722_v39 = vpack.c.bf16 %v1880_v37, %v1879_v33  ;;  %v1911_v40 = vld [vmem:[%s3818_s6 + $0x170] sm:$0xff]  ;;  %v1912_v41 = vld [vmem:[%s3818_s6 + $0x178] sm:$0xff] }
 0x6dc   : > { %v1755_v5 = vmul.f32 1.442695, %v1753_v27  ;;  %v2754_v42 = vpack.c.bf16 %v1912_v41, %v1911_v40 }
 0x6dd   : > { %2872 = vpow2.f32 %v1757_v47  ;;  %2751 = vmatpush3.bf16.msra.mxu0 %v2750_v4 }
 0x6de   : > { %2874 = vpow2.f32 %v1755_v5  ;;  %2753 = vmatprep.subr.bf16.mxu0 %v2752_v43 }
 0x6e1   : > { %2755 = vmatpush3.bf16.msra.mxu0 %v2754_v42 }
 0x6e7   : > { %v3508_v25 = vpop.eup %2872 }
 0x6e8   : > { %v3510_v49 = vpop.eup %2874  ;;  %v1762_v51 = vsel %vm507_vm0, %v3508_v25, 0.0 }
 0x6e9   : > { %1763 = vadd.xlane.f32.xlu1 %v1762_v51  ;;  %v1759_v53 = vsel %vm507_vm0, %v3510_v49, 0.0 }
 0x6ea   : > { %1760 = vadd.xlane.f32.xlu0 %v1759_v53  ;;  %v1865_v53 = vld [vmem:[%s3818_s6] sm:$0xff] }
 0x6eb   : > { %v2694_v34 = vpack.c.bf16 %v1866_v54, %v1865_v53 }
 0x776   : > { %v1764_v45 = vpop.xlane.xlu1 %1763 }
 0x777   : > { %2876 = vrcp.f32 %v1764_v45  ;;  %v1761_v27 = vpop.xlane.xlu0 %1760 }
 0x778   : > { %2878 = vrcp.f32 %v1761_v27 }
 0x781   : > { %v2877_v47 = vpop.eup %2876 }
 0x782   : > { %v2879_v5 = vpop.eup %2878  ;;  %v1768_v51 = vmul.f32 %v2877_v47, %v3508_v25  ;;  %v2352_v47 = vld [vmem:[%s3819_s7] ss:$0 sm:$0xff] }
 0x783   : > { %v1767_v56 = vmul.f32 %v2879_v5, %v3510_v49  ;;  %v1867_v49 = vld [vmem:[%s3818_s6 + $0x10] sm:$0xff] }
 0x784   : > { %v1770_v25 = vmul.f32 %v3442_v55, %v1768_v51  ;;  %v1886_v55 = vld [vmem:[%s3818_s6 + $0xa8] sm:$0xff]  ;;  %v2698_v62 = vpack.c.bf16 %v1868_v38, %v1867_v49 }
 0x785   : > { %v1769_v60 = vmul.f32 %v3438_v52, %v1767_v56  ;;  %v1885_v52 = vld [vmem:[%s3818_s6 + $0xa0] sm:$0xff] }
 0x786   : > { %2349 = vst.msk [vmem:[%s3446_s18 + $0x38] sm:$0xff] %vm507_vm0, %v1770_v25  ;;  %v2700_v63 = vpack.c.bf16 %v1886_v55, %v1885_v52 }
 0x787   : > { %2348 = vst.msk [vmem:[%s3446_s18 + $0x30] sm:$0xff] %vm507_vm0, %v1769_v60  ;;  %2577 = vmatprep.mubr.msk.f32.mxu1 %vm507_vm0, %v1769_v60 }
 0x788   : > { %2578 = vmatmul.mubr.msk.f32.vlgmr.msra.gmra.mrb[26].mxu1 %vm507_vm0, %v1770_v25 }
 0x789   : > { %2695 = vmatpush3.bf16.msra.mxu1 %v2694_v34  ;;  %2000 = vmatprep.mubr.f32.mxu1 %v3483_v48  ;;  %v2702_v48 = vpack.c.bf16 %v1870_v2, %v1869_v0 }
 0x78a   : > { %2697 = vmatprep.subr.bf16.mxu1 %v2696_v61 }
 0x78d   : > { %2699 = vmatpush3.bf16.msra.mxu1 %v2698_v62 }
 0x78e   : > { %2701 = vmatprep.subr.bf16.mxu1 %v2700_v63 }
 0x791   : > { %2703 = vmatpush3.bf16.msra.mxu1 %v2702_v48 }
 0x792   : > { %2705 = vmatprep.subr.bf16.mxu1 %v2704_v12 }
 0x795   : > { %2707 = vmatpush3.bf16.msra.mxu1 %v2706_v9 }
 0x796   : > { %2709 = vmatprep.subr.bf16.mxu1 %v2708_v10 }
 0x799   : > { %2711 = vmatpush3.bf16.msra.mxu1 %v2710_v15 }
 0x79a   : > { %2713 = vmatprep.subr.bf16.mxu1 %v2712_v16 }
 0x79d   : > { %2715 = vmatpush3.bf16.msra.mxu1 %v2714_v7 }
 0x79e   : > { %2717 = vmatprep.subr.bf16.mxu1 %v2716_v26 }
 0x7a1   : > { %2719 = vmatpush3.bf16.msra.mxu1 %v2718_v31 }
 0x7a2   : > { %2721 = vmatprep.subr.bf16.mxu1 %v2720_v32 }
 0x7a5   : > { %2723 = vmatpush3.bf16.msra.mxu1 %v2722_v39 }
 0x7a8   : > { %2001 = vmatmul.mubr.f32.vlgmr.msra.gmra.mrb[28].mxu1 %v3479_v44 }
 0x7a9   : > { %2005 = vmatprep.mubr.f32.mxu1 %v3481_v46 }
 0x7ac   : > { %2006 = vmatmul.mubr.f32.gmra.mrb[30].mxu1 %v3477_v19 }
 0x85b   : > { %v2579_v21 = vpop.f32.mrb[26].mxu1 }
 0x85c   : > { %v1846_v4 = vpop.f32.mrb[27].mxu1 }
 0x85d   : > { %2075 = vmatprep.mubr.f32.mxu0 %v1846_v4 }
 0x85e   : > { %2076 = vmatmul.mubr.f32.vlgmr.msra.gmra.mrb[28].mxu0 %v3504_v36 }
 0x85f   : > { %2080 = vmatprep.mubr.f32.mxu0 %v2579_v21 }
 0x862   : > { %2081 = vmatmul.mubr.f32.gmra.mrb[30].mxu0 %v3502_v35 }
 0x87b   : > { %v2448_v19 = vpop.f32.mrb[28].mxu1 }
 0x87c   : > { %v2449_v44 = vpop.f32.mrb[29].mxu1 }
 0x87d   : > { %v2450_v46 = vadd.f32 %v2449_v44, %v2448_v19 }
 0x87f   : > { %v2451_v43 = vpop.f32.mrb[30].mxu1  ;;  %v2003_v36 = vadd.f32 %v2450_v46, %v2352_v47 }
 0x880   : > { %v2452_v45 = vpop.f32.mrb[31].mxu1 }
 0x881   : > { %v2453_v27 = vadd.f32 %v2452_v45, %v2451_v43 }
 0x883   : > { %v2008_v57 = vadd.f32 %v2453_v27, %v2352_v47 }
 0x931   : > { %v2486_v5 = vpop.f32.mrb[28].mxu0 }
 0x932   : > { %v2487_v51 = vpop.f32.mrb[29].mxu0 }
 0x933   : > { %v2488_v53 = vadd.f32 %v2487_v51, %v2486_v5 }
 0x935   : > { %v2078_v54 = vadd.f32 %v2488_v53, %v2003_v36  ;;  %v2489_v35 = vpop.f32.mrb[30].mxu0 }
 0x936   : > { %v2490_v56 = vpop.f32.mrb[31].mxu0 }
 0x937   : > { %2086 = vst.msk [vmem:[%s424_s15] sm:$0xff] %vm507_vm0, %v2078_v54  ;;  %v2491_v58 = vadd.f32 %v2490_v56, %v2489_v35 }
 0x939   : > { %v2083_v25 = vadd.f32 %v2491_v58, %v2008_v57 }
 0x93b   : > { %2087 = vst.msk [vmem:[%s424_s15 + $0x8] sm:$0xff] %vm507_vm0, %v2083_v25 }
 0x93c   : > { %2893 = shalt.err (!%p2890_p7)
}
 0x93d   : > { %s2894_s23 = scalar_lea.hbm %s3734_s16, 256  ;;  %s2898_s21 = scalar_lea.hbm %s3821_s9, 1024 }
 0x93e   : > { %p2895_p9 = scmp.ne.s32.totalorder %s3734_s16, %s2894_s23  ;;  %p2899_p12 = scmp.lt.u32.totalorder %s3734_s16, %s3821_s9 }
 0x93f   : > { %p2900_p13 = scmp.lt.u32.totalorder %s2898_s21, %s2894_s23  ;;  %p2902_p1 = scmp.lt.u32.totalorder %s2894_s23, %s3734_s16 }
 0x940   : > { %p2896_p10 = pnand %p2895_p9, %p3097_p3 }
 0x941   : > { %p2901_p0 = por %p2900_p13, %p2899_p12 }
 0x942   : > { %p2897_p11 = pneg %p2896_p10 }
 0x943   : > { %p2903_p2 = por %p2902_p1, %p2901_p0 }
 0x945   : > { %p2904_p4 = pnand %p2903_p2, %p2897_p11 }
 0x947   : > { %2907 = shalt.err (!%p2904_p4)
}
 0x948   : > { %s2982_s22 = smov 128   ;;  %s2983_s30 = smov 8  }
 0x949   : > { %2756 = dma.vmem_to_hbm [thread:$0]  (%p3097_p3), %s3736_s24, 256, %s3734_s16, %s2089_s27, %s2982_s22, %s2982_s22, %s2983_s30  }
 0x94a   : > { %s2094_s11 = scalar_lea.sflag [#allocation6], %s3420_s28 }
 0x94b   : > { %s2359_s23 = sshll.u32 %s2966_s17, 4  ;;  %s2143_s15 = sshll.u32 %s3446_s18, 4  ;;  %s2144_s15 = int_to_ptr.vmem [resolvable:$true] %s2143_s15 }
 0x94c   : > { %s2124_s19 = sadd.s32 %s2359_s23, %s3127_s25  ;;  %s2984_s28 = smov 256  }
 0x94d   : > { %s2360_s21 = sshll.u32 %s2124_s19, 7  ;;  %2757 = sst [smem:[#allocation8]] (%p3097_p3), %s2984_s28 }
 0x94e   : > { %s2126_s24 = scalar_lea.hbm %s3822_s10, %s2360_s21  ;;  %s2985_s16 = smov 512  }
 0x94f   : > { %2758 = sst [smem:[#allocation8 + $0x1]] (%p3097_p3), %s2985_s16  ;;  %s2986_s27 = smov 2  }
 0x950   : > { %2759 = sst [smem:[#allocation8 + $0x2]] (%p3097_p3), %s2986_s27  ;;  %s2987_s17 = smov 128  }
 0x951   : > { %2760 = sst [smem:[#allocation8 + $0x3]] (%p3097_p3), %s2987_s17  ;;  %s2988_s25 = smov 8  }
 0x952   : > { %2761 = sst [smem:[#allocation8 + $0x4]] (%p3097_p3), %s2987_s17  ;;  %s2989_s18 = smov [#allocation7]  }
 0x953   : > { %2762 = sst [smem:[#allocation8 + $0x5]] (%p3097_p3), %s2988_s25  ;;  %s2990_s22 = smov 0  }
 0x954   : > { %2763 = dma.general (%p3097_p3), %s2144_s15, 1024, %s2126_s24, %s2094_s11, %s2989_s18, [#allocation8], %s2990_s22, 0  }
 0x955 PF: > { %p2773_p5 = scmp.ge.s32.totalorder %s2978_s20, 2  ;;  %s2171_s23 = sand.u32 1, %s2950_s13  }
 0x956   : > { %s2172_s19 = scalar_lea.sflag [#allocation4], %s2171_s23 }
 0x957   : > { %p2767_p6 = pnand %p2773_p5, %p3106_p8 }
 0x959   : > { %2941 = dma.done.wait (!%p2767_p6), %s2172_s19, 256  }
 0x95a   : > { %2943 = vsyncadd (!%p2767_p6), %s2172_s19, 4294967040  ;;  %s2181_s21 = scalar_lea.sflag [#allocation6], %s2171_s23 }
 0x95b   : > { %2945 = dma.done.wait (!%p2767_p6), %s2181_s21, 1024  }
 0x95c   : > { %2947 = vsyncadd (!%p2767_p6), %s2181_s21, 4294966272  ;;  %s27_s20 = sadd.s32 1, %s2978_s20   ;;  %s3839_s26 = sld [smem:[#allocation11_spill]] }
 0x95d   : > { %p24_p7 = scmp.ge.s32.totalorder %s27_s20, 6   ;;  %s3840_s15 = sld [smem:[#allocation17_spill]] }
 0x95e   : > { %s3841_s16 = sld [smem:[#allocation12_spill]]  ;;  %s3842_s17 = sld [smem:[#allocation13_spill]] }
 0x95f   : > { %s3843_s18 = sld [smem:[#allocation14_spill]]  ;;  %s3844_s19 = sld [smem:[#allocation15_spill]] }
 0x960   : > { %s3845_s13 = smov %s2954_s14  ;;  %26 = sbr.rel (!%p24_p7) target bundleno = 7 (0x7), region = 122 }
 0x962   : > { %s3846_s14 = smov %s3839_s26 }
 0x967   :  { %2186 = vsyncpa [#allocation4], 1 }
 0x968   :  { %2188 = vsyncpa [#allocation4 + $0x1], 1 }
 0x969   :  { %2189 = vsyncpa [#allocation6], 1 }
 0x96a   :  { %2191 = vsyncpa [#allocation6 + $0x1], 1 }

</bundles_post_ra>
